<compile_context>
chip_gen: v6e
topology: v6e:2x2x1
jax: 0.10.0
libtpu: 0.0.40
codegen_flags: <defaults>
</compile_context>

<pallas_src>
import functools

import jax
import jax.numpy as jnp
from jax import lax
from jax.experimental import pallas as pl
from jax.experimental.pallas import tpu as pltpu


# ----------------------------------------------------------------------------
# Fused Pallas kernel: qkv projection + attention + residual pooling + proj
# ----------------------------------------------------------------------------
def _msa_fused_kernel(x_ref, wq_ref, wk_ref, wv_ref, wp_ref, bp_ref, o_ref, *,
                      scale, sp_idx, residual_pooling):
    # x_ref : (N, dim)              one batch element (batch dim squeezed)
    # wq/wk/wv_ref : (H, dim, hd)   head-stacked projection weights (resident)
    # wp_ref: (H, hd, dim_out)      head-sliced output projection (resident)
    # bp_ref: (1, dim_out)
    # o_ref : (N, dim_out)
    x = x_ref[...]
    num_heads = wq_ref.shape[0]
    xb = jnp.broadcast_to(x, (num_heads,) + x.shape)          # (H, N, dim)

    # q/k/v for all heads with batched MXU matmuls: (H, N, hd)
    dn_proj = (((2,), (1,)), ((0,), (0,)))                    # contract dim, batch H
    q = lax.dot_general(xb, wq_ref[...], dn_proj,
                        preferred_element_type=jnp.float32)
    k = lax.dot_general(xb, wk_ref[...], dn_proj,
                        preferred_element_type=jnp.float32)
    v = lax.dot_general(xb, wv_ref[...], dn_proj,
                        preferred_element_type=jnp.float32)

    # scores (H, Nq, Nk): contract head_dim directly — no explicit k transpose
    s = lax.dot_general(q * scale, k, (((2,), (2,)), ((0,), (0,))),
                        preferred_element_type=jnp.float32)

    # numerically-stable row softmax; reciprocal goes to the EUP slot
    m = jnp.max(s, axis=-1, keepdims=True)
    p = jnp.exp(s - m)
    attn = p * pl.reciprocal(jnp.sum(p, axis=-1, keepdims=True), approx=True)

    # out (H, N, hd): contract over keys, batch over heads
    o = lax.dot_general(attn.astype(v.dtype), v,
                        (((2,), (1,)), ((0,), (0,))),
                        preferred_element_type=jnp.float32)

    if residual_pooling:
        # x[:, :, sp_idx:, :] += q[:, :, sp_idx:, :]   (cls row excluded)
        row = lax.broadcasted_iota(jnp.int32, o.shape, 1)
        o = o + jnp.where(row >= sp_idx, q, jnp.float32(0.0))

    # output projection, head-sliced:  out = sum_h o[h] @ W_proj[h*hd:(h+1)*hd]
    out_h = lax.dot_general(o.astype(wp_ref.dtype), wp_ref[...],
                            (((2,), (1,)), ((0,), (0,))),
                            preferred_element_type=jnp.float32)  # (H, N, dim_out)
    out = jnp.sum(out_h, axis=0) + bp_ref[...]
    o_ref[...] = out.astype(o_ref.dtype)


# ----------------------------------------------------------------------------
# MultiScaleAttention forward (default config)
# ----------------------------------------------------------------------------
def multi_scale_attention(x, thw_shape, params, *, num_heads,
                          has_cls_embed=True, residual_pooling=True):
    """x: (B, N, dim) with N = 1 + prod(thw_shape).  Returns (out, q_shape)."""
    B, N, dim = x.shape
    dim_out = params["w_proj"].shape[1]
    head_dim = dim_out // num_heads
    scale = head_dim ** -0.5

    # Head-stacked weight layouts (weight-sized, one-off prep in plain JAX).
    w_qkv = params["w_qkv"]                                  # (dim, 3*dim_out)

    def split_heads(w):                                      # (dim, dim_out) -> (H, dim, hd)
        return w.reshape(dim, num_heads, head_dim).transpose(1, 0, 2)

    w_q = split_heads(w_qkv[:, :dim_out])
    w_k = split_heads(w_qkv[:, dim_out:2 * dim_out])
    w_v = split_heads(w_qkv[:, 2 * dim_out:])
    w_p = params["w_proj"].reshape(num_heads, head_dim, dim_out)   # (H, hd, dim_out)
    b_p = params["b_proj"].reshape(1, dim_out)

    # attention_pool is a no-op in the default config -> q_shape == thw_shape
    q_shape = list(thw_shape)
    sp_idx = 1 if has_cls_embed else 0

    kern = functools.partial(
        _msa_fused_kernel,
        scale=scale,
        sp_idx=sp_idx,
        residual_pooling=residual_pooling,
    )

    out = pl.pallas_call(
        kern,
        out_shape=jax.ShapeDtypeStruct((B, N, dim_out), x.dtype),
        grid=(B,),
        in_specs=[
            pl.BlockSpec((None, N, dim), lambda b: (b, 0, 0)),
            pl.BlockSpec((num_heads, dim, head_dim), lambda b: (0, 0, 0)),
            pl.BlockSpec((num_heads, dim, head_dim), lambda b: (0, 0, 0)),
            pl.BlockSpec((num_heads, dim, head_dim), lambda b: (0, 0, 0)),
            pl.BlockSpec((num_heads, head_dim, dim_out), lambda b: (0, 0, 0)),
            pl.BlockSpec((1, dim_out), lambda b: (0, 0)),
        ],
        out_specs=pl.BlockSpec((None, N, dim_out), lambda b: (b, 0, 0)),
        compiler_params=pltpu.CompilerParams(
            dimension_semantics=("parallel",)),
    )(x, w_q, w_k, w_v, w_p, b_p)

    return out, q_shape


# ----------------------------------------------------------------------------
# Pure-JAX reference for correctness checking
# ----------------------------------------------------------------------------
def reference(x, thw_shape, params, *, num_heads, has_cls_embed=True):
    B, N, dim = x.shape
    dim_out = params["w_proj"].shape[1]
    hd = dim_out // num_heads
    scale = hd ** -0.5
    qkv = (x @ params["w_qkv"]).reshape(B, N, 3, num_heads, hd)
    qkv = qkv.transpose(2, 0, 3, 1, 4)
    q, k, v = qkv[0], qkv[1], qkv[2]
    attn = (q * scale) @ jnp.swapaxes(k, -2, -1)
    attn = jax.nn.softmax(attn, axis=-1)
    o = attn @ v
    if has_cls_embed:
        o = o.at[:, :, 1:, :].add(q[:, :, 1:, :])
    else:
        o = o + q
    o = o.transpose(0, 2, 1, 3).reshape(B, N, dim_out)
    return o @ params["w_proj"] + params["b_proj"], list(thw_shape)


# ----------------------------------------------------------------------------
if __name__ == "__main__":
    # Small shapes: dim = dim_out = 32, num_heads = 4 (head_dim = 8),
    # thw = (2, 4, 4) -> N = 1 + 32 = 33 tokens (cls token first), B = 2.
    B = 2
    dim = 32
    dim_out = 32
    num_heads = 4
    thw_shape = (2, 4, 4)
    N = 1 + thw_shape[0] * thw_shape[1] * thw_shape[2]

    key = jax.random.PRNGKey(0)
    kx, kqkv, kproj, kb = jax.random.split(key, 4)

    x = jax.random.normal(kx, (B, N, dim), dtype=jnp.float32)
    params = {
        # nn.Linear(dim, 3*dim_out, bias=False): stored pre-transposed
        "w_qkv": 0.02 * jax.random.normal(kqkv, (dim, 3 * dim_out), jnp.float32),
        # nn.Linear(dim_out, dim_out) with bias
        "w_proj": 0.02 * jax.random.normal(kproj, (dim_out, dim_out), jnp.float32),
        "b_proj": 0.02 * jax.random.normal(kb, (dim_out,), jnp.float32),
    }

    out, q_shape = multi_scale_attention(
        x, thw_shape, params, num_heads=num_heads,
        has_cls_embed=True, residual_pooling=True)
    out = jax.block_until_ready(out)

    ref, ref_shape = reference(x, thw_shape, params, num_heads=num_heads,
                               has_cls_embed=True)
    ref = jax.block_until_ready(ref)

    assert q_shape == ref_shape, (q_shape, ref_shape)
    assert out.shape == (B, N, dim_out), out.shape
    # Tolerance relaxed vs 1e-5 because of the EUP approximate reciprocal in
    # the softmax denominator (perf-review recommendation).
    max_err = float(jnp.max(jnp.abs(out - ref)))
    assert jnp.allclose(out, ref, atol=1e-3, rtol=1e-3), max_err

    print("KERNEL_OK")
</pallas_src>

<mosaic_0001>
module attributes {stable_mosaic.version = 11 : i64} {
  func.func @_msa_fused_kernel(%arg0: i32, %arg1: memref<1x33x32xf32, #tpu.memory_space<vmem>>, %arg2: memref<4x32x8xf32, #tpu.memory_space<vmem>>, %arg3: memref<4x32x8xf32, #tpu.memory_space<vmem>>, %arg4: memref<4x32x8xf32, #tpu.memory_space<vmem>>, %arg5: memref<4x8x32xf32, #tpu.memory_space<vmem>>, %arg6: memref<1x32xf32, #tpu.memory_space<vmem>>, %arg7: memref<1x33x32xf32, #tpu.memory_space<vmem>>) attributes {dimension_semantics = [#tpu.dimension_semantics<parallel>], iteration_bounds = array<i64: 2>, scalar_prefetch = 0 : i64, scratch_operands = 0 : i64, tpu.core_type = #tpu.core_type<tc>, window_params = [{transform_indices = @transform_0, window_bounds = array<i64: 1, 33, 32>}, {pipeline_mode = #tpu.pipeline_mode<synchronous>, transform_indices = @transform_1, window_bounds = array<i64: 4, 32, 8>}, {pipeline_mode = #tpu.pipeline_mode<synchronous>, transform_indices = @transform_2, window_bounds = array<i64: 4, 32, 8>}, {pipeline_mode = #tpu.pipeline_mode<synchronous>, transform_indices = @transform_3, window_bounds = array<i64: 4, 32, 8>}, {pipeline_mode = #tpu.pipeline_mode<synchronous>, transform_indices = @transform_4, window_bounds = array<i64: 4, 8, 32>}, {pipeline_mode = #tpu.pipeline_mode<synchronous>, transform_indices = @transform_5, window_bounds = array<i64: 1, 32>}, {transform_indices = @transform_6, window_bounds = array<i64: 1, 33, 32>}]} {
    %c0 = arith.constant 0 : index
    %c0_0 = arith.constant 0 : index
    %c0_1 = arith.constant 0 : index
    %0 = vector.load %arg1[%c0, %c0_0, %c0_1] : memref<1x33x32xf32, #tpu.memory_space<vmem>>, vector<1x33x32xf32>
    %1 = vector.shape_cast %0 : vector<1x33x32xf32> to vector<33x32xf32>
    %2 = vector.shape_cast %1 : vector<33x32xf32> to vector<1x33x32xf32>
    %3 = vector.broadcast %2 : vector<1x33x32xf32> to vector<4x33x32xf32>
    %c0_2 = arith.constant 0 : index
    %c0_3 = arith.constant 0 : index
    %c0_4 = arith.constant 0 : index
    %4 = vector.load %arg2[%c0_2, %c0_3, %c0_4] : memref<4x32x8xf32, #tpu.memory_space<vmem>>, vector<4x32x8xf32>
    %cst = arith.constant dense<0.000000e+00> : vector<4x33x8xf32>
    %5 = tpu.matmul %3, %4, %cst {dimension_numbers = #tpu.dot_dimension_numbers<[2], [1], [1], [2], [0, 0, 0, 1, 1, 2], [0], [0]>} : vector<4x33x32xf32>, vector<4x32x8xf32>, vector<4x33x8xf32> -> vector<4x33x8xf32>
    %c0_5 = arith.constant 0 : index
    %c0_6 = arith.constant 0 : index
    %c0_7 = arith.constant 0 : index
    %6 = vector.load %arg3[%c0_5, %c0_6, %c0_7] : memref<4x32x8xf32, #tpu.memory_space<vmem>>, vector<4x32x8xf32>
    %cst_8 = arith.constant dense<0.000000e+00> : vector<4x33x8xf32>
    %7 = tpu.matmul %3, %6, %cst_8 {dimension_numbers = #tpu.dot_dimension_numbers<[2], [1], [1], [2], [0, 0, 0, 1, 1, 2], [0], [0]>} : vector<4x33x32xf32>, vector<4x32x8xf32>, vector<4x33x8xf32> -> vector<4x33x8xf32>
    %c0_9 = arith.constant 0 : index
    %c0_10 = arith.constant 0 : index
    %c0_11 = arith.constant 0 : index
    %8 = vector.load %arg4[%c0_9, %c0_10, %c0_11] : memref<4x32x8xf32, #tpu.memory_space<vmem>>, vector<4x32x8xf32>
    %cst_12 = arith.constant dense<0.000000e+00> : vector<4x33x8xf32>
    %9 = tpu.matmul %3, %8, %cst_12 {dimension_numbers = #tpu.dot_dimension_numbers<[2], [1], [1], [2], [0, 0, 0, 1, 1, 2], [0], [0]>} : vector<4x33x32xf32>, vector<4x32x8xf32>, vector<4x33x8xf32> -> vector<4x33x8xf32>
    %cst_13 = arith.constant 0.353553385 : f32
    %10 = vector.broadcast %cst_13 : f32 to vector<4x33x8xf32>
    %11 = arith.mulf %5, %10 : vector<4x33x8xf32>
    %cst_14 = arith.constant dense<0.000000e+00> : vector<4x33x33xf32>
    %12 = tpu.matmul %11, %7, %cst_14 {dimension_numbers = #tpu.dot_dimension_numbers<[2], [2], [1], [1], [0, 0, 0, 1, 1, 1], [0], [0]>} : vector<4x33x8xf32>, vector<4x33x8xf32>, vector<4x33x33xf32> -> vector<4x33x33xf32>
    %cst_15 = arith.constant dense<0xFF800000> : vector<4x33xf32>
    %13 = vector.multi_reduction <maximumf>, %12, %cst_15 [2] : vector<4x33x33xf32> to vector<4x33xf32>
    %14 = vector.shape_cast %13 : vector<4x33xf32> to vector<4x33x1xf32>
    %15 = vector.broadcast %14 : vector<4x33x1xf32> to vector<4x33x33xf32>
    %16 = arith.subf %12, %15 : vector<4x33x33xf32>
    %17 = math.exp %16 : vector<4x33x33xf32>
    %cst_16 = arith.constant dense<0.000000e+00> : vector<4x33xf32>
    %18 = vector.multi_reduction <add>, %17, %cst_16 [2] : vector<4x33x33xf32> to vector<4x33xf32>
    %19 = vector.shape_cast %18 : vector<4x33xf32> to vector<4x33x1xf32>
    %20 = tpu.reciprocal %19 {approx = true} : vector<4x33x1xf32> -> vector<4x33x1xf32>
    %21 = vector.broadcast %20 : vector<4x33x1xf32> to vector<4x33x33xf32>
    %22 = arith.mulf %17, %21 : vector<4x33x33xf32>
    %cst_17 = arith.constant dense<0.000000e+00> : vector<4x33x8xf32>
    %23 = tpu.matmul %22, %9, %cst_17 {dimension_numbers = #tpu.dot_dimension_numbers<[2], [1], [1], [2], [0, 0, 0, 1, 1, 2], [0], [0]>} : vector<4x33x33xf32>, vector<4x33x8xf32>, vector<4x33x8xf32> -> vector<4x33x8xf32>
    %24 = tpu.iota {dimensions = array<i32: 1>} : vector<4x33x8xi32>
    %c1_i32 = arith.constant 1 : i32
    %25 = vector.broadcast %c1_i32 : i32 to vector<4x33x8xi32>
    %26 = arith.cmpi sge, %24, %25 : vector<4x33x8xi32>
    %cst_18 = arith.constant 0.000000e+00 : f32
    %27 = vector.broadcast %cst_18 : f32 to vector<4x33x8xf32>
    %28 = arith.select %26, %5, %27 : vector<4x33x8xi1>, vector<4x33x8xf32>
    %29 = arith.addf %23, %28 : vector<4x33x8xf32>
    %c0_19 = arith.constant 0 : index
    %c0_20 = arith.constant 0 : index
    %c0_21 = arith.constant 0 : index
    %30 = vector.load %arg5[%c0_19, %c0_20, %c0_21] : memref<4x8x32xf32, #tpu.memory_space<vmem>>, vector<4x8x32xf32>
    %cst_22 = arith.constant dense<0.000000e+00> : vector<4x33x32xf32>
    %31 = tpu.matmul %29, %30, %cst_22 {dimension_numbers = #tpu.dot_dimension_numbers<[2], [1], [1], [2], [0, 0, 0, 1, 1, 2], [0], [0]>} : vector<4x33x8xf32>, vector<4x8x32xf32>, vector<4x33x32xf32> -> vector<4x33x32xf32>
    %cst_23 = arith.constant dense<0.000000e+00> : vector<33x32xf32>
    %32 = vector.multi_reduction <add>, %31, %cst_23 [0] : vector<4x33x32xf32> to vector<33x32xf32>
    %c0_24 = arith.constant 0 : index
    %c0_25 = arith.constant 0 : index
    %33 = vector.load %arg6[%c0_24, %c0_25] : memref<1x32xf32, #tpu.memory_space<vmem>>, vector<1x32xf32>
    %34 = vector.broadcast %33 : vector<1x32xf32> to vector<33x32xf32>
    %35 = arith.addf %32, %34 : vector<33x32xf32>
    %c0_26 = arith.constant 0 : index
    %c0_27 = arith.constant 0 : index
    %c0_28 = arith.constant 0 : index
    %36 = vector.load %arg7[%c0_26, %c0_27, %c0_28] : memref<1x33x32xf32, #tpu.memory_space<vmem>>, vector<1x33x32xf32>
    %37 = vector.shape_cast %36 : vector<1x33x32xf32> to vector<33x32xf32>
    %38 = vector.shape_cast %35 : vector<33x32xf32> to vector<1x33x32xf32>
    tpu.vector_store %arg7[%c0_26, %c0_27, %c0_28], %38 {strides = array<i32>} : memref<1x33x32xf32, #tpu.memory_space<vmem>>, vector<1x33x32xf32>,
    return
  }
  func.func @transform_0(%arg0: i32) -> (i32, i32, i32) {
    %c0_i32 = arith.constant 0 : i32
    %c0_i32_0 = arith.constant 0 : i32
    %c0_i32_1 = arith.constant 0 : i32
    return %arg0, %c0_i32, %c0_i32_0 : i32, i32, i32
  }
  func.func @transform_1(%arg0: i32) -> (i32, i32, i32) {
    %c0_i32 = arith.constant 0 : i32
    %c0_i32_0 = arith.constant 0 : i32
    %c0_i32_1 = arith.constant 0 : i32
    %c0_i32_2 = arith.constant 0 : i32
    return %c0_i32, %c0_i32_0, %c0_i32_1 : i32, i32, i32
  }
  func.func @transform_2(%arg0: i32) -> (i32, i32, i32) {
    %c0_i32 = arith.constant 0 : i32
    %c0_i32_0 = arith.constant 0 : i32
    %c0_i32_1 = arith.constant 0 : i32
    %c0_i32_2 = arith.constant 0 : i32
    return %c0_i32, %c0_i32_0, %c0_i32_1 : i32, i32, i32
  }
  func.func @transform_3(%arg0: i32) -> (i32, i32, i32) {
    %c0_i32 = arith.constant 0 : i32
    %c0_i32_0 = arith.constant 0 : i32
    %c0_i32_1 = arith.constant 0 : i32
    %c0_i32_2 = arith.constant 0 : i32
    return %c0_i32, %c0_i32_0, %c0_i32_1 : i32, i32, i32
  }
  func.func @transform_4(%arg0: i32) -> (i32, i32, i32) {
    %c0_i32 = arith.constant 0 : i32
    %c0_i32_0 = arith.constant 0 : i32
    %c0_i32_1 = arith.constant 0 : i32
    %c0_i32_2 = arith.constant 0 : i32
    return %c0_i32, %c0_i32_0, %c0_i32_1 : i32, i32, i32
  }
  func.func @transform_5(%arg0: i32) -> (i32, i32) {
    %c0_i32 = arith.constant 0 : i32
    %c0_i32_0 = arith.constant 0 : i32
    %c0_i32_1 = arith.constant 0 : i32
    return %c0_i32, %c0_i32_0 : i32, i32
  }
  func.func @transform_6(%arg0: i32) -> (i32, i32, i32) {
    %c0_i32 = arith.constant 0 : i32
    %c0_i32_0 = arith.constant 0 : i32
    %c0_i32_1 = arith.constant 0 : i32
    return %arg0, %c0_i32, %c0_i32_0 : i32, i32, i32
  }
}

</mosaic_0001>

<bundles_post_ra>
// kernel: tpu_custom_call.1
= control target key start
LH: loop header
LB: loop body
LE: loop exit
PB: predicated region body
PF: predicated region fallthrough
CT: control target
= control target key end

     0   :  { %s4166_s21 = smov 0   ;;  %s5279_s0 = inlined_call_operand.vmem [shape: f32[2,33,32], index: 0, kind: input, shape index: {}]   ;;  %s5280_s1 = inlined_call_operand.vmem [shape: f32[4,32,8], index: 1, kind: input, shape index: {}]   ;;  %s5281_s2 = inlined_call_operand.vmem [shape: f32[4,32,8], index: 2, kind: input, shape index: {}]   ;;  %s5282_s3 = inlined_call_operand.vmem [shape: f32[4,32,8], index: 3, kind: input, shape index: {}]   ;;  %s5283_s4 = inlined_call_operand.vmem [shape: f32[4,8,32], index: 4, kind: input, shape index: {}]   ;;  %s5284_s5 = inlined_call_operand.vmem [shape: f32[1,32], index: 5, kind: input, shape index: {}]   ;;  %s5285_s6 = inlined_call_operand.vmem [shape: f32[2,33,32], index: 6, kind: output, shape index: {}]  }
   0x1 LB: > { %s3120_s22 = sadd.s32 4294967295, %s4127_s21   ;;  %p3124_p0 = scmp.ge.s32.totalorder %s4127_s21, 1  ;;  %s4127_s21 = sphi %s4166_s21, %s16_s21  }
   0x2   : > { %p212_p1 = scmp.lt.s32.totalorder %s4127_s21, 3 }
   0x4   : > { %p213_p2 = pnand %p3124_p0, %p212_p1 }
   0x5   : > { %p242_p3 = scmp.lt.s32.totalorder (!%p213_p2), %s3120_s22, 1 }
   0x6   : > { %216 = sbr.rel (%p213_p2) target bundleno = 1231 (0x4cf), region = 44 }
   0xb   : > { %v260_v0 = vld [vmem:[%s5280_s1 + $0x18] sm:$0xff]  ;;  %v5286_v2 = vmov 0.0   ;;  %v259_v3 = vld [vmem:[%s5280_s1 + $0x10] sm:$0xff]  ;;  %s5290_s22 = smov (!%p242_p3, %s3120_s22), 1  ;;  %v258_v5 = vld [vmem:[%s5280_s1 + $0x8] sm:$0xff]  ;;  %vm273_vm0 = vcmask 261120  }
   0xc   : > { %v264_v1 = vld [vmem:[%s5280_s1 + $0x38] sm:$0xff]  ;;  %3486 = vmatprep.subr.mxu0 %v5286_v2  ;;  %3509 = vmatprep.subr.mxu1 %v5286_v2  ;;  %v263_v4 = vld [vmem:[%s5280_s1 + $0x30] sm:$0xff]  ;;  %v262_v6 = vld [vmem:[%s5280_s1 + $0x28] sm:$0xff]  ;;  %s4030_s11 = smul.u32 40, %s5290_s22  ;;  %vm4130_vm1 = vmmov 0   ;;  %vm1421_vm2 = vcmask 64512  }
   0xd   : > { %3487 = vmatpush3.msra.mxu0 %v260_v0  ;;  %3510 = vmatpush3.msra.mxu1 %v264_v1  ;;  %v257_v7 = vld [vmem:[%s5280_s1] sm:$0xff]  ;;  %v268_v10 = vld [vmem:[%s5280_s1 + $0x58] sm:$0xff]  ;;  %v267_v13 = vld [vmem:[%s5280_s1 + $0x50] sm:$0xff]  ;;  %vm2170_vm3 = vcmask 1040384   ;;  %vm1902_vm4 = vcmask 269312   ;;  %vm1915_vm5 = vcmask 262144  }
   0xe   : > { %3488 = vmatprep.subr.mxu0 %v5286_v2  ;;  %3511 = vmatprep.subr.mxu1 %v5286_v2  ;;  %v261_v8 = vld [vmem:[%s5280_s1 + $0x20] sm:$0xff]  ;;  %s4212_s18 = scalar_lea.vmem %s5279_s0, %s4030_s11  ;;  %v272_v12 = vld [vmem:[%s5280_s1 + $0x78] sm:$0xff]  ;;  %v271_v15 = vld [vmem:[%s5280_s1 + $0x70] sm:$0xff]  ;;  %s5252_s29 = scalar_lea.vmem %s5285_s6, %s4030_s11  ;;  %vm3040_vm7 = vcmask 253952  }
   0xf   : > { %3489 = vmatpush3.msra.mxu0 %v259_v3  ;;  %3512 = vmatpush3.msra.mxu1 %v263_v4  ;;  %v4217_v9 = vld [vmem:[%s4212_s18] sm:$0xff]  ;;  %v4234_v11 = vld [vmem:[%s4212_s18 + $0x8] sm:$0xff]  ;;  %v4251_v14 = vld [vmem:[%s4212_s18 + $0x10] sm:$0xff] }
  0x10   : > { %3490 = vmatprep.subr.mxu0 %v5286_v2  ;;  %3513 = vmatprep.subr.mxu1 %v5286_v2  ;;  %v266_v16 = vld [vmem:[%s5280_s1 + $0x48] sm:$0xff]  ;;  %v4272_v17 = vld [vmem:[%s4212_s18 + $0x18] sm:$0xff]  ;;  %v265_v19 = vld [vmem:[%s5280_s1 + $0x40] sm:$0xff] }
  0x11   : > { %3491 = vmatpush3.msra.mxu0 %v258_v5  ;;  %3514 = vmatpush3.msra.mxu1 %v262_v6  ;;  %v270_v18 = vld [vmem:[%s5280_s1 + $0x68] sm:$0xff]  ;;  %v4293_v20 = vld [vmem:[%s4212_s18 + $0x20] sm:$0x1]  ;;  %v652_v22 = vld [vmem:[%s5281_s2 + $0x18] sm:$0xff] }
  0x12   : > { %3492 = vmatprep.subr.mxu0 %v5286_v2  ;;  %3515 = vmatprep.subr.mxu1 %v5286_v2  ;;  %v269_v21 = vld [vmem:[%s5280_s1 + $0x60] sm:$0xff]  ;;  %v656_v23 = vld [vmem:[%s5281_s2 + $0x38] sm:$0xff]  ;;  %v651_v24 = vld [vmem:[%s5281_s2 + $0x10] sm:$0xff] }
  0x13   : > { %3493 = vmatpush3.msra.mxu0 %v257_v7  ;;  %3494 = vmatprep.mubr.msk.f32.mxu0 %vm4130_vm1, %v5286_v2  ;;  %v655_v25 = vld [vmem:[%s5281_s2 + $0x30] sm:$0xff]  ;;  %v650_v26 = vld [vmem:[%s5281_s2 + $0x8] sm:$0xff]  ;;  %v649_v28 = vld [vmem:[%s5281_s2] sm:$0xff] }
  0x14   : > { %3516 = vmatpush3.msra.mxu1 %v261_v8  ;;  %3517 = vmatprep.mubr.msk.f32.mxu1 %vm4130_vm1, %v5286_v2  ;;  %v654_v27 = vld [vmem:[%s5281_s2 + $0x28] sm:$0xff]  ;;  %v653_v29 = vld [vmem:[%s5281_s2 + $0x20] sm:$0xff]  ;;  %v660_v30 = vld [vmem:[%s5281_s2 + $0x58] sm:$0xff] }
  0x15   : > { %3495 = vmatmul.mubr.msk.f32.vlgmr.msra.gmra.mxu0 %vm273_vm0, %v4217_v9  ;;  %3518 = vmatmul.mubr.msk.f32.vlgmr.msra.gmra.mxu1 %vm273_vm0, %v4217_v9  ;;  %v664_v31 = vld [vmem:[%s5281_s2 + $0x78] sm:$0xff]  ;;  %v659_v32 = vld [vmem:[%s5281_s2 + $0x50] sm:$0xff]  ;;  %v658_v34 = vld [vmem:[%s5281_s2 + $0x48] sm:$0xff] }
  0x16   : > { %3532 = vmatprep.subr.mxu0 %v5286_v2  ;;  %3497 = vmatprep.mubr.msk.f32.mxu0 %vm4130_vm1, %v5286_v2  ;;  %v663_v33 = vld [vmem:[%s5281_s2 + $0x70] sm:$0xff]  ;;  %v662_v35 = vld [vmem:[%s5281_s2 + $0x68] sm:$0xff]  ;;  %v657_v36 = vld [vmem:[%s5281_s2 + $0x40] sm:$0xff] }
  0x17   : > { %3533 = vmatpush3.msra.mxu0 %v268_v10  ;;  %3520 = vmatprep.mubr.msk.f32.mxu1 %vm4130_vm1, %v5286_v2  ;;  %v661_v37 = vld [vmem:[%s5281_s2 + $0x60] sm:$0xff]  ;;  %v1028_v38 = vld [vmem:[%s5282_s3 + $0x18] sm:$0xff]  ;;  %v1027_v39 = vld [vmem:[%s5282_s3 + $0x10] sm:$0xff] }
  0x18   : > { %3555 = vmatprep.subr.mxu1 %v5286_v2  ;;  %3534 = vmatprep.subr.mxu0 %v5286_v2  ;;  %v1032_v40 = vld [vmem:[%s5282_s3 + $0x38] sm:$0xff]  ;;  %v1026_v41 = vld [vmem:[%s5282_s3 + $0x8] sm:$0xff]  ;;  %v1031_v42 = vld [vmem:[%s5282_s3 + $0x30] sm:$0xff] }
  0x19   : > { %3498 = vmatmul.mubr.msk.f32.gmra.mxu0 %vm273_vm0, %v4234_v11  ;;  %3521 = vmatmul.mubr.msk.f32.gmra.mxu1 %vm273_vm0, %v4234_v11  ;;  %v1025_v43 = vld [vmem:[%s5282_s3] sm:$0xff]  ;;  %v1030_v44 = vld [vmem:[%s5282_s3 + $0x28] sm:$0xff]  ;;  %v1036_v46 = vld [vmem:[%s5282_s3 + $0x58] sm:$0xff] }
  0x1a   : > { %3556 = vmatpush3.msra.mxu1 %v272_v12  ;;  %3535 = vmatpush3.msra.mxu0 %v267_v13  ;;  %v1029_v45 = vld [vmem:[%s5282_s3 + $0x20] sm:$0xff]  ;;  %v1040_v47 = vld [vmem:[%s5282_s3 + $0x78] sm:$0xff]  ;;  %v1035_v48 = vld [vmem:[%s5282_s3 + $0x50] sm:$0xff] }
  0x1b   : > { %3500 = vmatprep.mubr.msk.f32.mxu0 %vm4130_vm1, %v5286_v2  ;;  %3523 = vmatprep.mubr.msk.f32.mxu1 %vm4130_vm1, %v5286_v2  ;;  %v1039_v49 = vld [vmem:[%s5282_s3 + $0x70] sm:$0xff]  ;;  %v1034_v50 = vld [vmem:[%s5282_s3 + $0x48] sm:$0xff]  ;;  %v1033_v52 = vld [vmem:[%s5282_s3 + $0x40] sm:$0xff] }
  0x1c   : > { %3557 = vmatprep.subr.mxu1 %v5286_v2  ;;  %3536 = vmatprep.subr.mxu0 %v5286_v2  ;;  %v1038_v51 = vld [vmem:[%s5282_s3 + $0x68] sm:$0xff]  ;;  %v1037_v53 = vld [vmem:[%s5282_s3 + $0x60] sm:$0xff] }
  0x1d   : > { %3501 = vmatmul.mubr.msk.f32.gmra.mxu0 %vm273_vm0, %v4251_v14  ;;  %3524 = vmatmul.mubr.msk.f32.gmra.mxu1 %vm273_vm0, %v4251_v14 }
  0x1e   : > { %3558 = vmatpush3.msra.mxu1 %v271_v15  ;;  %3503 = vmatprep.mubr.msk.f32.mxu0 %vm4130_vm1, %v5286_v2 }
  0x1f   : > { %3526 = vmatprep.mubr.msk.f32.mxu1 %vm4130_vm1, %v5286_v2  ;;  %3537 = vmatpush3.msra.mxu0 %v266_v16 }
  0x20   : > { %3559 = vmatprep.subr.mxu1 %v5286_v2  ;;  %3538 = vmatprep.subr.mxu0 %v5286_v2 }
  0x21   : > { %3504 = vmatmul.mubr.msk.f32.gmra.mxu0 %vm273_vm0, %v4272_v17  ;;  %3527 = vmatmul.mubr.msk.f32.gmra.mxu1 %vm273_vm0, %v4272_v17 }
  0x22   : > { %3506 = vmatprep.mubr.msk.f32.mxu0 %vm4130_vm1, %v5286_v2  ;;  %3529 = vmatprep.mubr.msk.f32.mxu1 %vm4130_vm1, %v5286_v2 }
  0x23   : > { %3560 = vmatpush3.msra.mxu1 %v270_v18  ;;  %3539 = vmatpush3.msra.mxu0 %v265_v19 }
  0x24   : > { %3561 = vmatprep.subr.mxu1 %v5286_v2  ;;  %3578 = vmatprep.subr.mxu0 %v5286_v2 }
  0x25   : > { %3507 = vmatmul.mubr.msk.f32.gmra.mxu0 %vm273_vm0, %v4293_v20  ;;  %3530 = vmatmul.mubr.msk.f32.gmra.mxu1 %vm273_vm0, %v4293_v20 }
  0x26   : > { %3540 = vmatprep.mubr.msk.f32.mxu0 %vm4130_vm1, %v5286_v2  ;;  %3562 = vmatpush3.msra.mxu1 %v269_v21 }
  0x27   : > { %3563 = vmatprep.mubr.msk.f32.mxu1 %vm4130_vm1, %v5286_v2  ;;  %3601 = vmatprep.subr.mxu1 %v5286_v2 }
  0x29   : > { %3541 = vmatmul.mubr.msk.f32.vlgmr.msra.gmra.mxu0 %vm273_vm0, %v4217_v9  ;;  %3564 = vmatmul.mubr.msk.f32.vlgmr.msra.gmra.mxu1 %vm273_vm0, %v4217_v9 }
  0x2a   : > { %3579 = vmatpush3.msra.mxu0 %v652_v22  ;;  %3543 = vmatprep.mubr.msk.f32.mxu0 %vm4130_vm1, %v5286_v2 }
  0x2b   : > { %3566 = vmatprep.mubr.msk.f32.mxu1 %vm4130_vm1, %v5286_v2  ;;  %3580 = vmatprep.subr.mxu0 %v5286_v2 }
  0x2c   : > { %3602 = vmatpush3.msra.mxu1 %v656_v23  ;;  %3581 = vmatpush3.msra.mxu0 %v651_v24 }
  0x2d   : > { %3544 = vmatmul.mubr.msk.f32.gmra.mxu0 %vm273_vm0, %v4234_v11  ;;  %3567 = vmatmul.mubr.msk.f32.gmra.mxu1 %vm273_vm0, %v4234_v11 }
  0x2e   : > { %3546 = vmatprep.mubr.msk.f32.mxu0 %vm4130_vm1, %v5286_v2  ;;  %3569 = vmatprep.mubr.msk.f32.mxu1 %vm4130_vm1, %v5286_v2 }
  0x2f   : > { %3603 = vmatprep.subr.mxu1 %v5286_v2  ;;  %3582 = vmatprep.subr.mxu0 %v5286_v2 }
  0x30   : > { %3604 = vmatpush3.msra.mxu1 %v655_v25  ;;  %3583 = vmatpush3.msra.mxu0 %v650_v26 }
  0x31   : > { %3547 = vmatmul.mubr.msk.f32.gmra.mxu0 %vm273_vm0, %v4251_v14  ;;  %3570 = vmatmul.mubr.msk.f32.gmra.mxu1 %vm273_vm0, %v4251_v14 }
  0x32   : > { %3549 = vmatprep.mubr.msk.f32.mxu0 %vm4130_vm1, %v5286_v2  ;;  %3572 = vmatprep.mubr.msk.f32.mxu1 %vm4130_vm1, %v5286_v2 }
  0x33   : > { %3605 = vmatprep.subr.mxu1 %v5286_v2  ;;  %3584 = vmatprep.subr.mxu0 %v5286_v2 }
  0x34   : > { %3606 = vmatpush3.msra.mxu1 %v654_v27  ;;  %3585 = vmatpush3.msra.mxu0 %v649_v28 }
  0x35   : > { %3550 = vmatmul.mubr.msk.f32.gmra.mxu0 %vm273_vm0, %v4272_v17  ;;  %3573 = vmatmul.mubr.msk.f32.gmra.mxu1 %vm273_vm0, %v4272_v17 }
  0x36   : > { %3552 = vmatprep.mubr.msk.f32.mxu0 %vm4130_vm1, %v5286_v2  ;;  %3575 = vmatprep.mubr.msk.f32.mxu1 %vm4130_vm1, %v5286_v2 }
  0x37   : > { %3607 = vmatprep.subr.mxu1 %v5286_v2  ;;  %3624 = vmatprep.subr.mxu0 %v5286_v2 }
  0x38   : > { %3608 = vmatpush3.msra.mxu1 %v653_v29 }
  0x39   : > { %3553 = vmatmul.mubr.msk.f32.gmra.mxu0 %vm273_vm0, %v4293_v20  ;;  %3576 = vmatmul.mubr.msk.f32.gmra.mxu1 %vm273_vm0, %v4293_v20 }
  0x3a   : > { %3586 = vmatprep.mubr.msk.f32.mxu0 %vm4130_vm1, %v5286_v2  ;;  %3609 = vmatprep.mubr.msk.f32.mxu1 %vm4130_vm1, %v5286_v2 }
  0x3b   : > { %3647 = vmatprep.subr.mxu1 %v5286_v2 }
  0x3d   : > { %3587 = vmatmul.mubr.msk.f32.vlgmr.msra.gmra.mxu0 %vm273_vm0, %v4217_v9  ;;  %3610 = vmatmul.mubr.msk.f32.vlgmr.msra.gmra.mxu1 %vm273_vm0, %v4217_v9 }
  0x3e   : > { %3589 = vmatprep.mubr.msk.f32.mxu0 %vm4130_vm1, %v5286_v2  ;;  %3612 = vmatprep.mubr.msk.f32.mxu1 %vm4130_vm1, %v5286_v2 }
  0x3f   : > { %3625 = vmatpush3.msra.mxu0 %v660_v30  ;;  %3648 = vmatpush3.msra.mxu1 %v664_v31 }
  0x40   : > { %3626 = vmatprep.subr.mxu0 %v5286_v2  ;;  %3649 = vmatprep.subr.mxu1 %v5286_v2 }
  0x41   : > { %3590 = vmatmul.mubr.msk.f32.gmra.mxu0 %vm273_vm0, %v4234_v11  ;;  %3613 = vmatmul.mubr.msk.f32.gmra.mxu1 %vm273_vm0, %v4234_v11 }
  0x42   : > { %3592 = vmatprep.mubr.msk.f32.mxu0 %vm4130_vm1, %v5286_v2  ;;  %3615 = vmatprep.mubr.msk.f32.mxu1 %vm4130_vm1, %v5286_v2 }
  0x43   : > { %3627 = vmatpush3.msra.mxu0 %v659_v32  ;;  %3650 = vmatpush3.msra.mxu1 %v663_v33 }
  0x44   : > { %3628 = vmatprep.subr.mxu0 %v5286_v2  ;;  %3651 = vmatprep.subr.mxu1 %v5286_v2 }
  0x45   : > { %3593 = vmatmul.mubr.msk.f32.gmra.mxu0 %vm273_vm0, %v4251_v14  ;;  %3616 = vmatmul.mubr.msk.f32.gmra.mxu1 %vm273_vm0, %v4251_v14 }
  0x46   : > { %3595 = vmatprep.mubr.msk.f32.mxu0 %vm4130_vm1, %v5286_v2  ;;  %3618 = vmatprep.mubr.msk.f32.mxu1 %vm4130_vm1, %v5286_v2 }
  0x47   : > { %3629 = vmatpush3.msra.mxu0 %v658_v34  ;;  %3652 = vmatpush3.msra.mxu1 %v662_v35 }
  0x48   : > { %3630 = vmatprep.subr.mxu0 %v5286_v2  ;;  %3653 = vmatprep.subr.mxu1 %v5286_v2 }
  0x49   : > { %3596 = vmatmul.mubr.msk.f32.gmra.mxu0 %vm273_vm0, %v4272_v17  ;;  %3619 = vmatmul.mubr.msk.f32.gmra.mxu1 %vm273_vm0, %v4272_v17 }
  0x4a   : > { %3598 = vmatprep.mubr.msk.f32.mxu0 %vm4130_vm1, %v5286_v2  ;;  %3621 = vmatprep.mubr.msk.f32.mxu1 %vm4130_vm1, %v5286_v2 }
  0x4b   : > { %3631 = vmatpush3.msra.mxu0 %v657_v36  ;;  %3654 = vmatpush3.msra.mxu1 %v661_v37 }
  0x4c   : > { %3670 = vmatprep.subr.mxu0 %v5286_v2  ;;  %3693 = vmatprep.subr.mxu1 %v5286_v2 }
  0x4d   : > { %3599 = vmatmul.mubr.msk.f32.gmra.mxu0 %vm273_vm0, %v4293_v20  ;;  %3622 = vmatmul.mubr.msk.f32.gmra.mxu1 %vm273_vm0, %v4293_v20 }
  0x4e   : > { %3632 = vmatprep.mubr.msk.f32.mxu0 %vm4130_vm1, %v5286_v2  ;;  %3655 = vmatprep.mubr.msk.f32.mxu1 %vm4130_vm1, %v5286_v2 }
  0x51   : > { %3633 = vmatmul.mubr.msk.f32.vlgmr.msra.gmra.mxu0 %vm273_vm0, %v4217_v9  ;;  %3656 = vmatmul.mubr.msk.f32.vlgmr.msra.gmra.mxu1 %vm273_vm0, %v4217_v9 }
  0x52   : > { %3635 = vmatprep.mubr.msk.f32.mxu0 %vm4130_vm1, %v5286_v2  ;;  %3658 = vmatprep.mubr.msk.f32.mxu1 %vm4130_vm1, %v5286_v2 }
  0x53   : > { %3671 = vmatpush3.msra.mxu0 %v1028_v38  ;;  %3694 = vmatpush3.msra.mxu1 %v1032_v40 }
  0x54   : > { %3672 = vmatprep.subr.mxu0 %v5286_v2  ;;  %3695 = vmatprep.subr.mxu1 %v5286_v2 }
  0x55   : > { %3636 = vmatmul.mubr.msk.f32.gmra.mxu0 %vm273_vm0, %v4234_v11  ;;  %3659 = vmatmul.mubr.msk.f32.gmra.mxu1 %vm273_vm0, %v4234_v11 }
  0x56   : > { %3638 = vmatprep.mubr.msk.f32.mxu0 %vm4130_vm1, %v5286_v2  ;;  %3661 = vmatprep.mubr.msk.f32.mxu1 %vm4130_vm1, %v5286_v2 }
  0x57   : > { %3673 = vmatpush3.msra.mxu0 %v1027_v39  ;;  %3696 = vmatpush3.msra.mxu1 %v1031_v42 }
  0x58   : > { %3674 = vmatprep.subr.mxu0 %v5286_v2  ;;  %3697 = vmatprep.subr.mxu1 %v5286_v2 }
  0x59   : > { %3639 = vmatmul.mubr.msk.f32.gmra.mxu0 %vm273_vm0, %v4251_v14  ;;  %3662 = vmatmul.mubr.msk.f32.gmra.mxu1 %vm273_vm0, %v4251_v14 }
  0x5a   : > { %3641 = vmatprep.mubr.msk.f32.mxu0 %vm4130_vm1, %v5286_v2  ;;  %3664 = vmatprep.mubr.msk.f32.mxu1 %vm4130_vm1, %v5286_v2 }
  0x5b   : > { %3675 = vmatpush3.msra.mxu0 %v1026_v41  ;;  %3698 = vmatpush3.msra.mxu1 %v1030_v44 }
  0x5c   : > { %3676 = vmatprep.subr.mxu0 %v5286_v2  ;;  %3699 = vmatprep.subr.mxu1 %v5286_v2 }
  0x5d   : > { %3642 = vmatmul.mubr.msk.f32.gmra.mxu0 %vm273_vm0, %v4272_v17  ;;  %3665 = vmatmul.mubr.msk.f32.gmra.mxu1 %vm273_vm0, %v4272_v17 }
  0x5e   : > { %3644 = vmatprep.mubr.msk.f32.mxu0 %vm4130_vm1, %v5286_v2  ;;  %3667 = vmatprep.mubr.msk.f32.mxu1 %vm4130_vm1, %v5286_v2 }
  0x5f   : > { %3677 = vmatpush3.msra.mxu0 %v1025_v43  ;;  %3700 = vmatpush3.msra.mxu1 %v1029_v45 }
  0x60   : > { %3716 = vmatprep.subr.mxu0 %v5286_v2  ;;  %3739 = vmatprep.subr.mxu1 %v5286_v2 }
  0x61   : > { %3645 = vmatmul.mubr.msk.f32.gmra.mxu0 %vm273_vm0, %v4293_v20  ;;  %3668 = vmatmul.mubr.msk.f32.gmra.mxu1 %vm273_vm0, %v4293_v20 }
  0x62   : > { %3678 = vmatprep.mubr.msk.f32.mxu0 %vm4130_vm1, %v5286_v2  ;;  %3701 = vmatprep.mubr.msk.f32.mxu1 %vm4130_vm1, %v5286_v2 }
  0x65   : > { %3679 = vmatmul.mubr.msk.f32.vlgmr.msra.gmra.mxu0 %vm273_vm0, %v4217_v9  ;;  %3702 = vmatmul.mubr.msk.f32.vlgmr.msra.gmra.mxu1 %vm273_vm0, %v4217_v9 }
  0x66   : > { %3681 = vmatprep.mubr.msk.f32.mxu0 %vm4130_vm1, %v5286_v2  ;;  %3704 = vmatprep.mubr.msk.f32.mxu1 %vm4130_vm1, %v5286_v2 }
  0x67   : > { %3717 = vmatpush3.msra.mxu0 %v1036_v46  ;;  %3740 = vmatpush3.msra.mxu1 %v1040_v47 }
  0x68   : > { %3718 = vmatprep.subr.mxu0 %v5286_v2  ;;  %3741 = vmatprep.subr.mxu1 %v5286_v2 }
  0x69   : > { %3682 = vmatmul.mubr.msk.f32.gmra.mxu0 %vm273_vm0, %v4234_v11  ;;  %3705 = vmatmul.mubr.msk.f32.gmra.mxu1 %vm273_vm0, %v4234_v11 }
  0x6a   : > { %3684 = vmatprep.mubr.msk.f32.mxu0 %vm4130_vm1, %v5286_v2  ;;  %3707 = vmatprep.mubr.msk.f32.mxu1 %vm4130_vm1, %v5286_v2 }
  0x6b   : > { %3719 = vmatpush3.msra.mxu0 %v1035_v48  ;;  %3742 = vmatpush3.msra.mxu1 %v1039_v49 }
  0x6c   : > { %3720 = vmatprep.subr.mxu0 %v5286_v2  ;;  %3743 = vmatprep.subr.mxu1 %v5286_v2 }
  0x6d   : > { %3685 = vmatmul.mubr.msk.f32.gmra.mxu0 %vm273_vm0, %v4251_v14  ;;  %3708 = vmatmul.mubr.msk.f32.gmra.mxu1 %vm273_vm0, %v4251_v14 }
  0x6e   : > { %3687 = vmatprep.mubr.msk.f32.mxu0 %vm4130_vm1, %v5286_v2  ;;  %3710 = vmatprep.mubr.msk.f32.mxu1 %vm4130_vm1, %v5286_v2 }
  0x6f   : > { %3721 = vmatpush3.msra.mxu0 %v1034_v50  ;;  %3744 = vmatpush3.msra.mxu1 %v1038_v51 }
  0x70   : > { %3722 = vmatprep.subr.mxu0 %v5286_v2  ;;  %3745 = vmatprep.subr.mxu1 %v5286_v2 }
  0x71   : > { %3688 = vmatmul.mubr.msk.f32.gmra.mxu0 %vm273_vm0, %v4272_v17  ;;  %3711 = vmatmul.mubr.msk.f32.gmra.mxu1 %vm273_vm0, %v4272_v17 }
  0x72   : > { %3690 = vmatprep.mubr.msk.f32.mxu0 %vm4130_vm1, %v5286_v2  ;;  %3713 = vmatprep.mubr.msk.f32.mxu1 %vm4130_vm1, %v5286_v2 }
  0x73   : > { %3723 = vmatpush3.msra.mxu0 %v1033_v52  ;;  %3746 = vmatpush3.msra.mxu1 %v1037_v53 }
  0x74   : > { %3762 = vmatprep.subr.mxu0 %v5286_v2  ;;  %3787 = vmatprep.subr.mxu1 %v5286_v2 }
  0x75   : > { %3691 = vmatmul.mubr.msk.f32.gmra.mxu0 %vm273_vm0, %v4293_v20  ;;  %3714 = vmatmul.mubr.msk.f32.gmra.mxu1 %vm273_vm0, %v4293_v20 }
  0x76   : > { %3724 = vmatprep.mubr.msk.f32.mxu0 %vm4130_vm1, %v5286_v2  ;;  %3747 = vmatprep.mubr.msk.f32.mxu1 %vm4130_vm1, %v5286_v2 }
  0x79   : > { %3725 = vmatmul.mubr.msk.f32.vlgmr.msra.gmra.mxu0 %vm273_vm0, %v4217_v9  ;;  %3748 = vmatmul.mubr.msk.f32.vlgmr.msra.gmra.mxu1 %vm273_vm0, %v4217_v9 }
  0x7a   : > { %3727 = vmatprep.mubr.msk.f32.mxu0 %vm4130_vm1, %v5286_v2  ;;  %3750 = vmatprep.mubr.msk.f32.mxu1 %vm4130_vm1, %v5286_v2 }
  0x7d   : > { %3728 = vmatmul.mubr.msk.f32.gmra.mxu0 %vm273_vm0, %v4234_v11  ;;  %3751 = vmatmul.mubr.msk.f32.gmra.mxu1 %vm273_vm0, %v4234_v11 }
  0x7e   : > { %3730 = vmatprep.mubr.msk.f32.mxu0 %vm4130_vm1, %v5286_v2  ;;  %3753 = vmatprep.mubr.msk.f32.mxu1 %vm4130_vm1, %v5286_v2 }
  0x81   : > { %3731 = vmatmul.mubr.msk.f32.gmra.mxu0 %vm273_vm0, %v4251_v14  ;;  %3754 = vmatmul.mubr.msk.f32.gmra.mxu1 %vm273_vm0, %v4251_v14 }
  0x82   : > { %3733 = vmatprep.mubr.msk.f32.mxu0 %vm4130_vm1, %v5286_v2  ;;  %3756 = vmatprep.mubr.msk.f32.mxu1 %vm4130_vm1, %v5286_v2 }
  0x85   : > { %3734 = vmatmul.mubr.msk.f32.gmra.mxu0 %vm273_vm0, %v4272_v17  ;;  %3757 = vmatmul.mubr.msk.f32.gmra.mxu1 %vm273_vm0, %v4272_v17 }
  0x86   : > { %3736 = vmatprep.mubr.msk.f32.mxu0 %vm4130_vm1, %v5286_v2  ;;  %3759 = vmatprep.mubr.msk.f32.mxu1 %vm4130_vm1, %v5286_v2 }
  0x89   : > { %3737 = vmatmul.mubr.msk.f32.gmra.mxu0 %vm273_vm0, %v4293_v20  ;;  %3760 = vmatmul.mubr.msk.f32.gmra.mxu1 %vm273_vm0, %v4293_v20 }
  0x8a   : > { %3772 = vmatprep.mubr.msk.f32.mxu0 %vm4130_vm1, %v5286_v2  ;;  %3797 = vmatprep.mubr.msk.f32.mxu1 %vm4130_vm1, %v5286_v2 }
  0xd5   : > { %v4637_v54 = vpop.f32.mrf.mxu0  ;;  %v4639_v55 = vpop.f32.mrf.mxu1 }
  0xd7   : > { %v3496_v56 = vpop.f32.mrf.mxu0  ;;  %v3519_v57 = vpop.f32.mrf.mxu1 }
  0xd9   : > { %v4641_v58 = vpop.f32.mrf.mxu0  ;;  %v4643_v59 = vpop.f32.mrf.mxu1 }
  0xdb   : > { %v3499_v60 = vpop.f32.mrf.mxu0  ;;  %v3522_v61 = vpop.f32.mrf.mxu1 }
  0xdd   : > { %v4645_v62 = vpop.f32.mrf.mxu0  ;;  %v4647_v63 = vpop.f32.mrf.mxu1 }
  0xdf   : > { %v3502_v0 = vpop.f32.mrf.mxu0  ;;  %v3525_v1 = vpop.f32.mrf.mxu1 }
  0xe1   : > { %v4649_v3 = vpop.f32.mrf.mxu0  ;;  %v4651_v4 = vpop.f32.mrf.mxu1 }
  0xe3   : > { %v3505_v5 = vpop.f32.mrf.mxu0  ;;  %v3528_v6 = vpop.f32.mrf.mxu1 }
  0xe5   : > { %v4653_v7 = vpop.f32.mrf.mxu0  ;;  %v4655_v8 = vpop.f32.mrf.mxu1 }
  0xe7   : > { %v3508_v9 = vpop.f32.mrf.mxu0  ;;  %v3531_v10 = vpop.f32.mrf.mxu1 }
  0xe9   : > { %v4657_v11 = vpop.f32.mrf.mxu0  ;;  %v4659_v12 = vpop.f32.mrf.mxu1 }
  0xeb   : > { %v3542_v13 = vpop.f32.mrf.mxu0  ;;  %v3565_v14 = vpop.f32.mrf.mxu1 }
  0xec   : > { %v1401_v14 = vmul.f32 0.35355338, %v4637_v54 }
  0xed   : > { %v4661_v15 = vpop.f32.mrf.mxu0  ;;  %v4663_v16 = vpop.f32.mrf.mxu1 }
  0xef   : > { %v3545_v17 = vpop.f32.mrf.mxu0  ;;  %v3568_v18 = vpop.f32.mrf.mxu1 }
  0xf0   : > { %v1406_v17 = vmul.f32 0.35355338, %v4639_v55 }
  0xf1   : > { %v4665_v19 = vpop.f32.mrf.mxu0  ;;  %v4667_v20 = vpop.f32.mrf.mxu1 }
  0xf3   : > { %v3548_v21 = vpop.f32.mrf.mxu0  ;;  %v3571_v22 = vpop.f32.mrf.mxu1 }
  0xf5   : > { %v4669_v23 = vpop.f32.mrf.mxu0  ;;  %v4671_v24 = vpop.f32.mrf.mxu1 }
  0xf7   : > { %v3551_v25 = vpop.f32.mrf.mxu0  ;;  %v3574_v26 = vpop.f32.mrf.mxu1 }
  0xf8   : > { %v1402_v26 = vmul.f32 0.35355338, %v4641_v58 }
  0xf9   : > { %v4673_v27 = vpop.f32.mrf.mxu0  ;;  %v4675_v28 = vpop.f32.mrf.mxu1 }
  0xfb   : > { %v3554_v29 = vpop.f32.mrf.mxu0  ;;  %v3577_v30 = vpop.f32.mrf.mxu1 }
  0xfc   : > { %v1407_v29 = vmul.f32 0.35355338, %v4643_v59 }
  0xfd   : > { %v731_v31 = vpop.f32.mrf.mxu0  ;;  %v821_v32 = vpop.f32.mrf.mxu1 }
  0xff   : > { %v3588_v33 = vpop.f32.mrf.mxu0  ;;  %v3611_v34 = vpop.f32.mrf.mxu1 }
 0x100   : > { %v1403_v33 = vmul.f32 0.35355338, %v4645_v62  ;;  %v1408_v34 = vmul.f32 0.35355338, %v4647_v63 }
 0x101   : > { %v736_v35 = vpop.f32.mrf.mxu0  ;;  %v826_v36 = vpop.f32.mrf.mxu1 }
 0x103   : > { %v3591_v37 = vpop.f32.mrf.mxu0  ;;  %v3614_v38 = vpop.f32.mrf.mxu1 }
 0x105   : > { %v741_v39 = vpop.f32.mrf.mxu0  ;;  %v831_v40 = vpop.f32.mrf.mxu1 }
 0x107   : > { %v3594_v41 = vpop.f32.mrf.mxu0  ;;  %v3617_v42 = vpop.f32.mrf.mxu1 }
 0x109   : > { %v746_v43 = vpop.f32.mrf.mxu0  ;;  %v836_v44 = vpop.f32.mrf.mxu1 }
 0x10b   : > { %v3597_v45 = vpop.f32.mrf.mxu0  ;;  %v3620_v46 = vpop.f32.mrf.mxu1 }
 0x10c   : > { %v1405_v45 = vmul.f32 0.35355338, %v4653_v7  ;;  %v1410_v46 = vmul.f32 0.35355338, %v4655_v8 }
 0x10d   : > { %v751_v47 = vpop.f32.mrf.mxu0  ;;  %v841_v48 = vpop.f32.mrf.mxu1 }
 0x10e   : > { %3763 = vmatpush3.xpose.msk.msra.mxu0 %vm1421_vm2, %v751_v47  ;;  %3788 = vmatpush3.xpose.msk.msra.mxu1 %vm1421_vm2, %v841_v48 }
 0x10f   : > { %v3600_v49 = vpop.f32.mrf.mxu0  ;;  %v3623_v50 = vpop.f32.mrf.mxu1  ;;  %3764 = vmatprep.subr.mxu0 %v5286_v2  ;;  %3789 = vmatprep.subr.mxu1 %v5286_v2 }
 0x111   : > { %v4681_v51 = vpop.f32.mrf.mxu0  ;;  %v4683_v52 = vpop.f32.mrf.mxu1 }
 0x112   : > { %3765 = vmatpush3.xpose.msk.msra.mxu0 %vm1421_vm2, %v746_v43  ;;  %3790 = vmatpush3.xpose.msk.msra.mxu1 %vm1421_vm2, %v836_v44 }
 0x113   : > { %v3634_v53 = vpop.f32.mrf.mxu0  ;;  %v3657_v56 = vpop.f32.mrf.mxu1  ;;  %3766 = vmatprep.subr.mxu0 %v5286_v2  ;;  %3791 = vmatprep.subr.mxu1 %v5286_v2 }
 0x114   : > { %v1411_v53 = vmul.f32 0.35355338, %v4657_v11  ;;  %v1416_v56 = vmul.f32 0.35355338, %v4659_v12 }
 0x115   : > { %v4689_v57 = vpop.f32.mrf.mxu0  ;;  %v4691_v60 = vpop.f32.mrf.mxu1 }
 0x116   : > { %3767 = vmatpush3.xpose.msk.msra.mxu0 %vm1421_vm2, %v741_v39  ;;  %3792 = vmatpush3.xpose.msk.msra.mxu1 %vm1421_vm2, %v831_v40  ;;  %v1404_v39 = vmul.f32 0.35355338, %v4649_v3  ;;  %v1409_v40 = vmul.f32 0.35355338, %v4651_v4 }
 0x117   : > { %v3637_v61 = vpop.f32.mrf.mxu0  ;;  %v3660_v0 = vpop.f32.mrf.mxu1  ;;  %3768 = vmatprep.subr.mxu0 %v5286_v2  ;;  %3793 = vmatprep.subr.mxu1 %v5286_v2 }
 0x118   : > { %v1412_v61 = vmul.f32 0.35355338, %v4661_v15  ;;  %v1417_v0 = vmul.f32 0.35355338, %v4663_v16 }
 0x119   : > { %v921_v1 = vpop.f32.mrf.mxu0  ;;  %v1011_v5 = vpop.f32.mrf.mxu1 }
 0x11a   : > { %3769 = vmatpush3.xpose.msk.msra.mxu0 %vm1421_vm2, %v736_v35  ;;  %3794 = vmatpush3.xpose.msk.msra.mxu1 %vm1421_vm2, %v826_v36 }
 0x11b   : > { %v3640_v6 = vpop.f32.mrf.mxu0  ;;  %v3663_v9 = vpop.f32.mrf.mxu1  ;;  %3770 = vmatprep.subr.mxu0 %v5286_v2  ;;  %3795 = vmatprep.subr.mxu1 %v5286_v2 }
 0x11c   : > { %v1413_v9 = vmul.f32 0.35355338, %v4665_v19 }
 0x11d   : > { %v926_v10 = vpop.f32.mrf.mxu0  ;;  %v1016_v13 = vpop.f32.mrf.mxu1 }
 0x11e   : > { %3771 = vmatpush3.xpose.msk.msra.mxu0 %vm1421_vm2, %v731_v31  ;;  %3796 = vmatpush3.xpose.msk.msra.mxu1 %vm1421_vm2, %v821_v32 }
 0x11f   : > { %v3643_v18 = vpop.f32.mrf.mxu0  ;;  %v3666_v21 = vpop.f32.mrf.mxu1  ;;  %3812 = vmatprep.subr.mxu0 %v5286_v2  ;;  %3837 = vmatprep.subr.mxu1 %v5286_v2 }
 0x120   : > { %v1420_v18 = vmul.f32 0.35355338, %v4675_v28 }
 0x121   : > { %v931_v22 = vpop.f32.mrf.mxu0  ;;  %v1021_v25 = vpop.f32.mrf.mxu1  ;;  %3773 = vmatmul.mubr.msk.f32.vlgmr.msra.gmra.mxu0 %vm1421_vm2, %v1401_v14  ;;  %3798 = vmatmul.mubr.msk.f32.vlgmr.msra.gmra.mxu1 %vm1421_vm2, %v1406_v17  ;;  %v1419_v14 = vmul.f32 0.35355338, %v4671_v24  ;;  %v1415_v17 = vmul.f32 0.35355338, %v4673_v27 }
 0x122   : > { %3813 = vmatpush3.xpose.msk.msra.mxu0 %vm1421_vm2, %v931_v22  ;;  %3838 = vmatpush3.xpose.msk.msra.mxu1 %vm1421_vm2, %v1021_v25 }
 0x123   : > { %v3646_v30 = vpop.f32.mrf.mxu0  ;;  %3775 = vmatprep.mubr.msk.f32.mxu0 %vm4130_vm1, %v5286_v2  ;;  %3800 = vmatprep.mubr.msk.f32.mxu1 %vm4130_vm1, %v5286_v2  ;;  %v3669_v31 = vpop.f32.mrf.mxu1 }
 0x124   : > { %3814 = vmatprep.subr.mxu0 %v5286_v2  ;;  %3839 = vmatprep.subr.mxu1 %v5286_v2 }
 0x125   : > { %3776 = vmatmul.mubr.msk.f32.gmra.mxu0 %vm1421_vm2, %v1402_v26  ;;  %3801 = vmatmul.mubr.msk.f32.gmra.mxu1 %vm1421_vm2, %v1407_v29  ;;  %v4721_v32 = vpop.f32.mrf.mxu0  ;;  %v4733_v36 = vpop.f32.mrf.mxu1 }
 0x126   : > { %3815 = vmatpush3.xpose.msk.msra.mxu0 %vm1421_vm2, %v926_v10  ;;  %3840 = vmatpush3.xpose.msk.msra.mxu1 %vm1421_vm2, %v1016_v13  ;;  %v1418_v10 = vmul.f32 0.35355338, %v4667_v20  ;;  %v1414_v13 = vmul.f32 0.35355338, %v4669_v23 }
 0x127   : > { %3778 = vmatprep.mubr.msk.f32.mxu0 %vm4130_vm1, %v5286_v2  ;;  %3803 = vmatprep.mubr.msk.f32.mxu1 %vm4130_vm1, %v5286_v2  ;;  %v3680_v35 = vpop.f32.mrf.mxu0  ;;  %v3703_v38 = vpop.f32.mrf.mxu1 }
 0x128   : > { %3816 = vmatprep.subr.mxu0 %v5286_v2  ;;  %3841 = vmatprep.subr.mxu1 %v5286_v2 }
 0x129   : > { %3779 = vmatmul.mubr.msk.f32.gmra.mxu0 %vm1421_vm2, %v1403_v33  ;;  %3804 = vmatmul.mubr.msk.f32.gmra.mxu1 %vm1421_vm2, %v1408_v34  ;;  %v4737_v37 = vpop.f32.mrf.mxu0  ;;  %v4749_v42 = vpop.f32.mrf.mxu1 }
 0x12a   : > { %3817 = vmatpush3.xpose.msk.msra.mxu0 %vm1421_vm2, %v921_v1  ;;  %3842 = vmatpush3.xpose.msk.msra.mxu1 %vm1421_vm2, %v1011_v5 }
 0x12b   : > { %3781 = vmatprep.mubr.msk.f32.mxu0 %vm4130_vm1, %v5286_v2  ;;  %3806 = vmatprep.mubr.msk.f32.mxu1 %vm4130_vm1, %v5286_v2  ;;  %v3683_v41 = vpop.f32.mrf.mxu0  ;;  %v3706_v44 = vpop.f32.mrf.mxu1 }
 0x12c   : > { %3818 = vmatprep.subr.mxu0 %v5286_v2  ;;  %3843 = vmatprep.subr.mxu1 %v5286_v2 }
 0x12d   : > { %3782 = vmatmul.mubr.msk.f32.gmra.mxu0 %vm1421_vm2, %v1404_v39  ;;  %3807 = vmatmul.mubr.msk.f32.gmra.mxu1 %vm1421_vm2, %v1409_v40  ;;  %v1117_v43 = vpop.f32.mrf.mxu0  ;;  %v1207_v48 = vpop.f32.mrf.mxu1 }
 0x12e   : > { %3819 = vmatpush3.xpose.msk.msra.mxu0 %vm1421_vm2, %v4689_v57  ;;  %3844 = vmatpush3.xpose.msk.msra.mxu1 %vm1421_vm2, %v4691_v60 }
 0x12f   : > { %3784 = vmatprep.mubr.msk.f32.mxu0 %vm4130_vm1, %v5286_v2  ;;  %3809 = vmatprep.mubr.msk.f32.mxu1 %vm4130_vm1, %v5286_v2  ;;  %v3686_v47 = vpop.f32.mrf.mxu0  ;;  %v3709_v50 = vpop.f32.mrf.mxu1 }
 0x130   : > { %3820 = vmatprep.subr.mxu0 %v5286_v2  ;;  %3845 = vmatprep.subr.mxu1 %v5286_v2 }
 0x131   : > { %3785 = vmatmul.mubr.msk.f32.gmra.mxu0 %vm1421_vm2, %v1405_v45  ;;  %3810 = vmatmul.mubr.msk.f32.gmra.mxu1 %vm1421_vm2, %v1410_v46  ;;  %v1122_v49 = vpop.f32.mrf.mxu0  ;;  %v1212_v60 = vpop.f32.mrf.mxu1 }
 0x132   : > { %3821 = vmatpush3.xpose.msk.msra.mxu0 %vm1421_vm2, %v4681_v51  ;;  %3846 = vmatpush3.xpose.msk.msra.mxu1 %vm1421_vm2, %v4683_v52 }
 0x133   : > { %3822 = vmatprep.mubr.msk.f32.mxu0 %vm4130_vm1, %v5286_v2  ;;  %3847 = vmatprep.mubr.msk.f32.mxu1 %vm4130_vm1, %v5286_v2  ;;  %v3689_v57 = vpop.f32.mrf.mxu0  ;;  %v3712_v52 = vpop.f32.mrf.mxu1 }
 0x134   : > { %3862 = vmatprep.subr.mxu0 %v5286_v2  ;;  %3887 = vmatprep.subr.mxu1 %v5286_v2 }
 0x135   : > { %3823 = vmatmul.mubr.msk.f32.vlgmr.msra.gmra.mxu0 %vm1421_vm2, %v1411_v53  ;;  %3848 = vmatmul.mubr.msk.f32.vlgmr.msra.gmra.mxu1 %vm1421_vm2, %v1416_v56  ;;  %v1127_v51 = vpop.f32.mrf.mxu0  ;;  %v1217_v5 = vpop.f32.mrf.mxu1 }
 0x136   : > { %3825 = vmatprep.mubr.msk.f32.mxu0 %vm4130_vm1, %v5286_v2  ;;  %3850 = vmatprep.mubr.msk.f32.mxu1 %vm4130_vm1, %v5286_v2 }
 0x137   : > { %3863 = vmatpush3.msk.msra.mxu0 %vm2170_vm3, %v1127_v51  ;;  %v3692_v1 = vpop.f32.mrf.mxu0  ;;  %v3715_v6 = vpop.f32.mrf.mxu1  ;;  %3888 = vmatpush3.msk.msra.mxu1 %vm2170_vm3, %v1217_v5 }
 0x138   : > { %3864 = vmatprep.subr.mxu0 %v5286_v2  ;;  %3889 = vmatprep.subr.mxu1 %v5286_v2 }
 0x139   : > { %3826 = vmatmul.mubr.msk.f32.gmra.mxu0 %vm1421_vm2, %v1412_v61  ;;  %3851 = vmatmul.mubr.msk.f32.gmra.mxu1 %vm1421_vm2, %v1417_v0  ;;  %v4833_v21 = vpop.f32.mrf.mxu0  ;;  %v4835_v22 = vpop.f32.mrf.mxu1 }
 0x13a   : > { %3828 = vmatprep.mubr.msk.f32.mxu0 %vm4130_vm1, %v5286_v2  ;;  %3853 = vmatprep.mubr.msk.f32.mxu1 %vm4130_vm1, %v5286_v2 }
 0x13b   : > { %3865 = vmatpush3.msra.mxu0 %v1122_v49  ;;  %3890 = vmatpush3.msra.mxu1 %v1212_v60  ;;  %v3726_v25 = vpop.f32.mrf.mxu0  ;;  %v3749_v26 = vpop.f32.mrf.mxu1 }
 0x13c   : > { %3866 = vmatprep.subr.mxu0 %v5286_v2  ;;  %3891 = vmatprep.subr.mxu1 %v5286_v2 }
 0x13d   : > { %3829 = vmatmul.mubr.msk.f32.gmra.mxu0 %vm1421_vm2, %v1413_v9  ;;  %3854 = vmatmul.mubr.msk.f32.gmra.mxu1 %vm1421_vm2, %v1418_v10  ;;  %v4837_v29 = vpop.f32.mrf.mxu0  ;;  %v4839_v30 = vpop.f32.mrf.mxu1 }
 0x13e   : > { %3831 = vmatprep.mubr.msk.f32.mxu0 %vm4130_vm1, %v5286_v2  ;;  %3856 = vmatprep.mubr.msk.f32.mxu1 %vm4130_vm1, %v5286_v2 }
 0x13f   : > { %3867 = vmatpush3.msra.mxu0 %v1117_v43  ;;  %3892 = vmatpush3.msra.mxu1 %v1207_v48  ;;  %v3729_v31 = vpop.f32.mrf.mxu0 }
 0x140   : > { %3868 = vmatprep.subr.mxu0 %v5286_v2  ;;  %3893 = vmatprep.subr.mxu1 %v5286_v2 }
 0x141   : > { %3832 = vmatmul.mubr.msk.f32.gmra.mxu0 %vm1421_vm2, %v1414_v13  ;;  %3857 = vmatmul.mubr.msk.f32.gmra.mxu1 %vm1421_vm2, %v1419_v14  ;;  %v4841_v33 = vpop.f32.mrf.mxu0 }
 0x142   : > { %3834 = vmatprep.mubr.msk.f32.mxu0 %vm4130_vm1, %v5286_v2  ;;  %3859 = vmatprep.mubr.msk.f32.mxu1 %vm4130_vm1, %v5286_v2 }
 0x143   : > { %3869 = vmatpush3.msra.mxu0 %v4737_v37  ;;  %3894 = vmatpush3.msra.mxu1 %v4749_v42  ;;  %v3732_v35 = vpop.f32.mrf.mxu0 }
 0x144   : > { %3870 = vmatprep.subr.mxu0 %v5286_v2  ;;  %3895 = vmatprep.subr.mxu1 %v5286_v2 }
 0x145   : > { %3835 = vmatmul.mubr.msk.f32.gmra.mxu0 %vm1421_vm2, %v1415_v17  ;;  %3860 = vmatmul.mubr.msk.f32.gmra.mxu1 %vm1421_vm2, %v1420_v18  ;;  %v4845_v37 = vpop.f32.mrf.mxu0 }
 0x146   : > { %3871 = vmatpush3.msra.mxu0 %v4721_v32  ;;  %3872 = vmatprep.mubr.msk.f32.mxu0 %vm4130_vm1, %v5286_v2  ;;  %v3752_v32 = vpop.f32.mrf.mxu1 }
 0x147   : > { %3896 = vmatpush3.msra.mxu1 %v4733_v36  ;;  %3912 = vmatprep.subr.mxu0 %v5286_v2  ;;  %v3735_v39 = vpop.f32.mrf.mxu0 }
 0x148   : > { %3897 = vmatprep.mubr.msk.f32.mxu1 %vm4130_vm1, %v5286_v2  ;;  %3937 = vmatprep.subr.mxu1 %v5286_v2  ;;  %v4843_v34 = vpop.f32.mrf.mxu1 }
 0x149   : > { %v4849_v41 = vpop.f32.mrf.mxu0 }
 0x14a   : > { %v3755_v36 = vpop.f32.mrf.mxu1 }
 0x14b   : > { %v3738_v43 = vpop.f32.mrf.mxu0 }
 0x14c   : > { %v4847_v38 = vpop.f32.mrf.mxu1 }
 0x14e   : > { %v3758_v40 = vpop.f32.mrf.mxu1 }
 0x150   : > { %v4851_v42 = vpop.f32.mrf.mxu1 }
 0x152   : > { %v3761_v44 = vpop.f32.mrf.mxu1 }
 0x1e1   : > { %v4853_v45 = vpop.f32.mrf.mxu0  ;;  %v4855_v46 = vpop.f32.mrf.mxu1 }
 0x1e2   : > { %v1903_v47 = vsel %vm1902_vm4, %v4853_v45, -inf  ;;  %v1919_v56 = vsel %vm1902_vm4, %v4855_v46, -inf }
 0x1e3   : > { %v3799_v48 = vpop.f32.mrf.mxu1  ;;  %1904 = vmax.xlane.f32.xlu0 %v1903_v47  ;;  %v3774_v49 = vpop.f32.mrf.mxu0 }
 0x1e5   : > { %v4859_v50 = vpop.f32.mrf.mxu0  ;;  %v4861_v53 = vpop.f32.mrf.mxu1 }
 0x1e6   : > { %v1906_v57 = vsel %vm1902_vm4, %v4859_v50, -inf  ;;  %v1922_v0 = vsel %vm1902_vm4, %v4861_v53, -inf }
 0x1e7   : > { %v3802_v60 = vpop.f32.mrf.mxu1  ;;  %1920 = vmax.xlane.f32.xlu0 %v1919_v56  ;;  %1907 = vmax.xlane.f32.xlu1 %v1906_v57  ;;  %v3777_v51 = vpop.f32.mrf.mxu0 }
 0x1e9   : > { %v4867_v52 = vpop.f32.mrf.mxu0  ;;  %v4869_v61 = vpop.f32.mrf.mxu1 }
 0x1ea   : > { %v1909_v1 = vsel %vm1902_vm4, %v4867_v52, -inf  ;;  %v1925_v13 = vsel %vm1902_vm4, %v4869_v61, -inf }
 0x1eb   : > { %v3805_v5 = vpop.f32.mrf.mxu1  ;;  %1923 = vmax.xlane.f32.xlu1 %v1922_v0  ;;  %1910 = vmax.xlane.f32.xlu0 %v1909_v1  ;;  %v3780_v6 = vpop.f32.mrf.mxu0 }
 0x1ed   : > { %v4875_v9 = vpop.f32.mrf.mxu0  ;;  %v4877_v10 = vpop.f32.mrf.mxu1 }
 0x1ee   : > { %v1912_v14 = vsel %vm1902_vm4, %v4875_v9, -inf  ;;  %v1928_v31 = vsel %vm1902_vm4, %v4877_v10, -inf }
 0x1ef   : > { %v3808_v17 = vpop.f32.mrf.mxu1  ;;  %1926 = vmax.xlane.f32.xlu1 %v1925_v13  ;;  %1913 = vmax.xlane.f32.xlu0 %v1912_v14  ;;  %v3783_v18 = vpop.f32.mrf.mxu0 }
 0x1f1   : > { %v4883_v25 = vpop.f32.mrf.mxu0  ;;  %v4885_v26 = vpop.f32.mrf.mxu1 }
 0x1f2   : > { %v1916_v32 = vsel %vm1915_vm5, %v4883_v25, -inf  ;;  %v1931_v43 = vsel %vm1915_vm5, %v4885_v26, -inf }
 0x1f3   : > { %v3811_v35 = vpop.f32.mrf.mxu1  ;;  %1929 = vmax.xlane.f32.xlu1 %v1928_v31  ;;  %1917 = vmax.xlane.f32.xlu0 %v1916_v32  ;;  %v3786_v36 = vpop.f32.mrf.mxu0 }
 0x1f5   : > { %v4891_v39 = vpop.f32.mrf.mxu0  ;;  %v4893_v40 = vpop.f32.mrf.mxu1 }
 0x1f6   : > { %v1934_v44 = vsel %vm1902_vm4, %v4891_v39, -inf  ;;  %v1949_v57 = vsel %vm1902_vm4, %v4893_v40, -inf }
 0x1f7   : > { %v3849_v47 = vpop.f32.mrf.mxu1  ;;  %1932 = vmax.xlane.f32.xlu1 %v1931_v43  ;;  %1935 = vmax.xlane.f32.xlu0 %v1934_v44  ;;  %v3824_v48 = vpop.f32.mrf.mxu0 }
 0x1f9   : > { %v4899_v49 = vpop.f32.mrf.mxu0  ;;  %v4901_v56 = vpop.f32.mrf.mxu1 }
 0x1fa   : > { %v1937_v60 = vsel %vm1902_vm4, %v4899_v49, -inf  ;;  %v1952_v6 = vsel %vm1902_vm4, %v4901_v56, -inf }
 0x1fb   : > { %v3852_v51 = vpop.f32.mrf.mxu1  ;;  %1950 = vmax.xlane.f32.xlu1 %v1949_v57  ;;  %1938 = vmax.xlane.f32.xlu0 %v1937_v60  ;;  %v3827_v0 = vpop.f32.mrf.mxu0 }
 0x1fd   : > { %v4907_v1 = vpop.f32.mrf.mxu0  ;;  %v4909_v5 = vpop.f32.mrf.mxu1 }
 0x1fe   : > { %v1940_v13 = vsel %vm1902_vm4, %v4907_v1, -inf  ;;  %v1955_v32 = vsel %vm1902_vm4, %v4909_v5, -inf }
 0x1ff   : > { %v3855_v14 = vpop.f32.mrf.mxu1  ;;  %1953 = vmax.xlane.f32.xlu1 %v1952_v6  ;;  %1941 = vmax.xlane.f32.xlu0 %v1940_v13  ;;  %v3830_v17 = vpop.f32.mrf.mxu0 }
 0x201   : > { %v4915_v18 = vpop.f32.mrf.mxu0  ;;  %v4917_v31 = vpop.f32.mrf.mxu1 }
 0x202   : > { %v1943_v35 = vsel %vm1902_vm4, %v4915_v18, -inf  ;;  %v1958_v48 = vsel %vm1902_vm4, %v4917_v31, -inf }
 0x203   : > { %v3858_v36 = vpop.f32.mrf.mxu1  ;;  %1956 = vmax.xlane.f32.xlu1 %v1955_v32  ;;  %1944 = vmax.xlane.f32.xlu0 %v1943_v35  ;;  %v3833_v43 = vpop.f32.mrf.mxu0 }
 0x205   : > { %v4923_v44 = vpop.f32.mrf.mxu0  ;;  %v4925_v47 = vpop.f32.mrf.mxu1 }
 0x206   : > { %v1946_v57 = vsel %vm1915_vm5, %v4923_v44, -inf  ;;  %v1961_v0 = vsel %vm1915_vm5, %v4925_v47, -inf }
 0x207   : > { %v3861_v60 = vpop.f32.mrf.mxu1  ;;  %1959 = vmax.xlane.f32.xlu1 %v1958_v48  ;;  %1947 = vmax.xlane.f32.xlu0 %v1946_v57  ;;  %v3836_v51 = vpop.f32.mrf.mxu0 }
 0x20b   : > { %1962 = vmax.xlane.f32.xlu1 %v1961_v0 }
 0x26c   : > { %v1905_v6 = vpop.xlane.xlu0 %1904 }
 0x26d   : > { %v1964_v13 = vsub.f32 %v4853_v45, %v1905_v6 }
 0x26f   : > { %v1984_v14 = vmul.f32 1.442695, %v1964_v13 }
 0x270   : > { %v1921_v17 = vpop.xlane.xlu0 %1920  ;;  %v1908_v32 = vpop.xlane.xlu1 %1907 }
 0x271   : > { %4041 = vpow2.f32 %v1984_v14  ;;  %v1969_v35 = vsub.f32 %v4855_v46, %v1921_v17  ;;  %v1965_v36 = vsub.f32 %v4859_v50, %v1908_v32 }
 0x273   : > { %v1994_v43 = vmul.f32 1.442695, %v1969_v35  ;;  %v1986_v60 = vmul.f32 1.442695, %v1965_v36 }
 0x274   : > { %v1924_v48 = vpop.xlane.xlu1 %1923  ;;  %v1911_v57 = vpop.xlane.xlu0 %1910 }
 0x275   : > { %4043 = vpow2.f32 %v1994_v43  ;;  %v1970_v51 = vsub.f32 %v4861_v53, %v1924_v48  ;;  %v1966_v0 = vsub.f32 %v4867_v52, %v1911_v57 }
 0x276   : > { %4045 = vpow2.f32 %v1986_v60 }
 0x277   : > { %v1996_v2 = vmul.f32 1.442695, %v1970_v51  ;;  %v1988_v45 = vmul.f32 1.442695, %v1966_v0 }
 0x278   : > { %v1927_v6 = vpop.xlane.xlu1 %1926  ;;  %v1914_v13 = vpop.xlane.xlu0 %1913 }
 0x279   : > { %4047 = vpow2.f32 %v1996_v2  ;;  %v1971_v14 = vsub.f32 %v4869_v61, %v1927_v6  ;;  %v1967_v46 = vsub.f32 %v4875_v9, %v1914_v13 }
 0x27a   : > { %4049 = vpow2.f32 %v1988_v45 }
 0x27b   : > { %v1998_v50 = vmul.f32 1.442695, %v1971_v14  ;;  %v1990_v17 = vmul.f32 1.442695, %v1967_v46 }
 0x27c   : > { %v1930_v32 = vpop.xlane.xlu1 %1929  ;;  %v1918_v35 = vpop.xlane.xlu0 %1917 }
 0x27d   : > { %4051 = vpow2.f32 %v1998_v50  ;;  %v1972_v53 = vsub.f32 %v4877_v10, %v1930_v32  ;;  %v1968_v52 = vsub.f32 %v4883_v25, %v1918_v35 }
 0x27e   : > { %v4942_v36 = vpop.eup %4041  ;;  %4053 = vpow2.f32 %v1990_v17 }
 0x27f   : > { %v2000_v43 = vmul.f32 1.442695, %v1972_v53  ;;  %v1992_v60 = vmul.f32 1.442695, %v1968_v52  ;;  %v2024_v2 = vsel %vm1902_vm4, %v4942_v36, 0.0 }
 0x280   : > { %v1933_v61 = vpop.xlane.xlu1 %1932  ;;  %v1936_v9 = vpop.xlane.xlu0 %1935  ;;  %2025 = vadd.xlane.f32.xlu0 %v2024_v2 }
 0x281   : > { %4055 = vpow2.f32 %v2000_v43  ;;  %v1973_v48 = vsub.f32 %v4885_v26, %v1933_v61  ;;  %v1974_v57 = vsub.f32 %v4891_v39, %v1936_v9 }
 0x282   : > { %v4948_v51 = vpop.eup %4043  ;;  %4057 = vpow2.f32 %v1992_v60 }
 0x283   : > { %v4950_v10 = vpop.eup %4045  ;;  %v2002_v25 = vmul.f32 1.442695, %v1973_v48  ;;  %v2004_v0 = vmul.f32 1.442695, %v1974_v57  ;;  %v2039_v45 = vsel %vm1902_vm4, %v4948_v51, 0.0 }
 0x284   : > { %2040 = vadd.xlane.f32.xlu1 %v2039_v45  ;;  %v1951_v6 = vpop.xlane.xlu1 %1950  ;;  %v1939_v13 = vpop.xlane.xlu0 %1938  ;;  %v2027_v14 = vsel %vm1902_vm4, %v4950_v10, 0.0 }
 0x285   : > { %4059 = vpow2.f32 %v2002_v25  ;;  %v1979_v26 = vsub.f32 %v4893_v40, %v1951_v6  ;;  %v1975_v39 = vsub.f32 %v4899_v49, %v1939_v13  ;;  %2028 = vadd.xlane.f32.xlu0 %v2027_v14 }
 0x286   : > { %v4958_v46 = vpop.eup %4047  ;;  %4061 = vpow2.f32 %v2004_v0 }
 0x287   : > { %v4960_v50 = vpop.eup %4049  ;;  %v2014_v17 = vmul.f32 1.442695, %v1979_v26  ;;  %v2006_v32 = vmul.f32 1.442695, %v1975_v39  ;;  %v2042_v35 = vsel %vm1902_vm4, %v4958_v46, 0.0 }
 0x288   : > { %2043 = vadd.xlane.f32.xlu1 %v2042_v35  ;;  %v1954_v53 = vpop.xlane.xlu1 %1953  ;;  %v1942_v52 = vpop.xlane.xlu0 %1941  ;;  %v2030_v43 = vsel %vm1902_vm4, %v4960_v50, 0.0 }
 0x289   : > { %4063 = vpow2.f32 %v2014_v17  ;;  %v1980_v40 = vsub.f32 %v4901_v56, %v1954_v53  ;;  %v1976_v49 = vsub.f32 %v4907_v1, %v1942_v52  ;;  %2031 = vadd.xlane.f32.xlu0 %v2030_v43 }
 0x28a   : > { %v4968_v60 = vpop.eup %4051  ;;  %4065 = vpow2.f32 %v2006_v32 }
 0x28b   : > { %v4970_v2 = vpop.eup %4053  ;;  %v2016_v61 = vmul.f32 1.442695, %v1980_v40  ;;  %v2008_v9 = vmul.f32 1.442695, %v1976_v49  ;;  %v2045_v48 = vsel %vm1902_vm4, %v4968_v60, 0.0 }
 0x28c   : > { %2046 = vadd.xlane.f32.xlu1 %v2045_v48  ;;  %v1957_v57 = vpop.xlane.xlu1 %1956  ;;  %v1945_v25 = vpop.xlane.xlu0 %1944  ;;  %v2033_v0 = vsel %vm1902_vm4, %v4970_v2, 0.0 }
 0x28d   : > { %4067 = vpow2.f32 %v2016_v61  ;;  %v1981_v56 = vsub.f32 %v4909_v5, %v1957_v57  ;;  %v1977_v1 = vsub.f32 %v4915_v18, %v1945_v25  ;;  %2034 = vadd.xlane.f32.xlu0 %v2033_v0 }
 0x28e   : > { %v4978_v45 = vpop.eup %4055  ;;  %4069 = vpow2.f32 %v2008_v9 }
 0x28f   : > { %v4980_v6 = vpop.eup %4057  ;;  %v2018_v13 = vmul.f32 1.442695, %v1981_v56  ;;  %v2010_v14 = vmul.f32 1.442695, %v1977_v1  ;;  %v2048_v26 = vsel %vm1902_vm4, %v4978_v45, 0.0 }
 0x290   : > { %2049 = vadd.xlane.f32.xlu1 %v2048_v26  ;;  %v1960_v39 = vpop.xlane.xlu1 %1959  ;;  %v2036_v17 = vsel %vm1915_vm5, %v4980_v6, 0.0  ;;  %v1948_v32 = vpop.xlane.xlu0 %1947 }
 0x291   : > { %4071 = vpow2.f32 %v2018_v13  ;;  %v1982_v5 = vsub.f32 %v4917_v31, %v1960_v39  ;;  %2037 = vadd.xlane.f32.xlu0 %v2036_v17  ;;  %v1978_v18 = vsub.f32 %v4923_v44, %v1948_v32 }
 0x292   : > { %v4988_v35 = vpop.eup %4059  ;;  %4073 = vpow2.f32 %v2010_v14 }
 0x293   : > { %v4990_v53 = vpop.eup %4061  ;;  %v2020_v52 = vmul.f32 1.442695, %v1982_v5  ;;  %v2012_v43 = vmul.f32 1.442695, %v1978_v18  ;;  %v2051_v40 = vsel %vm1915_vm5, %v4988_v35, 0.0 }
 0x294   : > { %2052 = vadd.xlane.f32.xlu1 %v2051_v40  ;;  %v1963_v49 = vpop.xlane.xlu1 %1962  ;;  %v2054_v61 = vsel %vm1902_vm4, %v4990_v53, 0.0 }
 0x295   : > { %4075 = vpow2.f32 %v2020_v52  ;;  %v1983_v31 = vsub.f32 %v4925_v47, %v1963_v49  ;;  %2055 = vadd.xlane.f32.xlu0 %v2054_v61 }
 0x296   : > { %v4997_v44 = vpop.eup %4063  ;;  %4077 = vpow2.f32 %v2012_v43 }
 0x297   : > { %v4999_v9 = vpop.eup %4065  ;;  %v2022_v48 = vmul.f32 1.442695, %v1983_v31  ;;  %v2069_v57 = vsel %vm1902_vm4, %v4997_v44, 0.0 }
 0x298   : > { %2070 = vadd.xlane.f32.xlu1 %v2069_v57  ;;  %v2057_v25 = vsel %vm1902_vm4, %v4999_v9, 0.0 }
 0x299   : > { %4079 = vpow2.f32 %v2022_v48  ;;  %2058 = vadd.xlane.f32.xlu0 %v2057_v25 }
 0x29a   : > { %v5005_v0 = vpop.eup %4067 }
 0x29b   : > { %v5007_v56 = vpop.eup %4069  ;;  %v2072_v47 = vsel %vm1902_vm4, %v5005_v0, 0.0 }
 0x29c   : > { %2073 = vadd.xlane.f32.xlu1 %v2072_v47  ;;  %v2060_v1 = vsel %vm1902_vm4, %v5007_v56, 0.0 }
 0x29d   : > { %2061 = vadd.xlane.f32.xlu0 %v2060_v1 }
 0x29e   : > { %v5013_v13 = vpop.eup %4071 }
 0x29f   : > { %v5015_v14 = vpop.eup %4073  ;;  %v2075_v26 = vsel %vm1902_vm4, %v5013_v13, 0.0 }
 0x2a0   : > { %2076 = vadd.xlane.f32.xlu1 %v2075_v26  ;;  %v2063_v39 = vsel %vm1902_vm4, %v5015_v14, 0.0 }
 0x2a1   : > { %2064 = vadd.xlane.f32.xlu0 %v2063_v39 }
 0x2a2   : > { %v5021_v17 = vpop.eup %4075 }
 0x2a3   : > { %v5023_v32 = vpop.eup %4077  ;;  %v2078_v5 = vsel %vm1902_vm4, %v5021_v17, 0.0 }
 0x2a4   : > { %2079 = vadd.xlane.f32.xlu1 %v2078_v5  ;;  %v2066_v18 = vsel %vm1915_vm5, %v5023_v32, 0.0 }
 0x2a5   : > { %2067 = vadd.xlane.f32.xlu0 %v2066_v18  ;;  %v5288_v18 = vmov 0.0  }
 0x2a6   : > { %v5029_v52 = vpop.eup %4079 }
 0x2a7   : > { %v2081_v43 = vsel %vm1915_vm5, %v5029_v52, 0.0 }
 0x2a8   : > { %2082 = vadd.xlane.f32.xlu1 %v2081_v43 }
 0x309   : > { %v2026_v40 = vpop.xlane.xlu0 %2025 }
 0x30a   : > { %4081 = vrcp.f32 %v2026_v40 }
 0x30d   : > { %v2041_v49 = vpop.xlane.xlu1 %2040 }
 0x30e   : > { %4083 = vrcp.f32 %v2041_v49  ;;  %v2029_v61 = vpop.xlane.xlu0 %2028 }
 0x30f   : > { %4085 = vrcp.f32 %v2029_v61 }
 0x311   : > { %v2044_v31 = vpop.xlane.xlu1 %2043 }
 0x312   : > { %4087 = vrcp.f32 %v2044_v31  ;;  %v2032_v48 = vpop.xlane.xlu0 %2031 }
 0x313   : > { %4089 = vrcp.f32 %v2032_v48 }
 0x315   : > { %v2047_v57 = vpop.xlane.xlu1 %2046 }
 0x316   : > { %4091 = vrcp.f32 %v2047_v57  ;;  %v2035_v25 = vpop.xlane.xlu0 %2034 }
 0x317   : > { %v4082_v47 = vpop.eup %4081  ;;  %4093 = vrcp.f32 %v2035_v25 }
 0x318   : > { %v2104_v1 = vmul.f32 %v4082_v47, %v4942_v36 }
 0x319   : > { %v2050_v26 = vpop.xlane.xlu1 %2049 }
 0x31a   : > { %4095 = vrcp.f32 %v2050_v26  ;;  %v2038_v39 = vpop.xlane.xlu0 %2037  ;;  %3873 = vmatmul.mubr.msk.f32.vlgmr.msra.gmra.mxu0 %vm1902_vm4, %v2104_v1 }
 0x31b   : > { %v4084_v5 = vpop.eup %4083  ;;  %4097 = vrcp.f32 %v2038_v39  ;;  %3913 = vmatpush3.msk.msra.mxu0 %vm2170_vm3, %v4849_v41  ;;  %3875 = vmatprep.mubr.msk.f32.mxu0 %vm4130_vm1, %v5288_v18  ;;  %v2588_v39 = vld [vmem:[%s5283_s4] sm:$0xff] }
 0x31c   : > { %v4086_v43 = vpop.eup %4085  ;;  %v2109_v40 = vmul.f32 %v4084_v5, %v4948_v51  ;;  %3914 = vmatprep.subr.mxu0 %v5288_v18 }
 0x31d   : > { %3915 = vmatpush3.msra.mxu0 %v4845_v37  ;;  %v2053_v36 = vpop.xlane.xlu1 %2052  ;;  %v2105_v49 = vmul.f32 %v4086_v43, %v4950_v10 }
 0x31e   : > { %4099 = vrcp.f32 %v2053_v36  ;;  %3916 = vmatprep.subr.mxu0 %v5288_v18  ;;  %v2056_v61 = vpop.xlane.xlu0 %2055  ;;  %3898 = vmatmul.mubr.msk.f32.vlgmr.msra.gmra.mxu1 %vm1902_vm4, %v2109_v40  ;;  %v2589_v36 = vld [vmem:[%s5283_s4 + $0x8] sm:$0xff] }
 0x31f   : > { %v4088_v41 = vpop.eup %4087  ;;  %4101 = vrcp.f32 %v2056_v61  ;;  %3876 = vmatmul.mubr.msk.f32.gmra.mxu0 %vm1902_vm4, %v2105_v49  ;;  %3938 = vmatpush3.msk.msra.mxu1 %vm2170_vm3, %v4851_v42 }
 0x320   : > { %v4090_v51 = vpop.eup %4089  ;;  %3917 = vmatpush3.msra.mxu0 %v4841_v33  ;;  %3939 = vmatprep.subr.mxu1 %v5288_v18  ;;  %v2110_v31 = vmul.f32 %v4088_v41, %v4958_v46 }
 0x321   : > { %3918 = vmatprep.subr.mxu0 %v5288_v18  ;;  %3940 = vmatpush3.msra.mxu1 %v4847_v38  ;;  %v2071_v37 = vpop.xlane.xlu1 %2070  ;;  %v2106_v10 = vmul.f32 %v4090_v51, %v4960_v50 }
 0x322   : > { %3919 = vmatpush3.msra.mxu0 %v4837_v29  ;;  %3900 = vmatprep.mubr.msk.f32.mxu1 %vm4130_vm1, %v5288_v18  ;;  %4103 = vrcp.f32 %v2071_v37  ;;  %v2059_v42 = vpop.xlane.xlu0 %2058 }
 0x323   : > { %v4092_v48 = vpop.eup %4091  ;;  %3941 = vmatprep.subr.mxu1 %v5288_v18  ;;  %3878 = vmatprep.mubr.msk.f32.mxu0 %vm4130_vm1, %v5288_v18  ;;  %4105 = vrcp.f32 %v2059_v42 }
 0x324   : > { %v4094_v33 = vpop.eup %4093  ;;  %3920 = vmatprep.subr.mxu0 %v5288_v18  ;;  %3879 = vmatmul.mubr.msk.f32.gmra.mxu0 %vm1902_vm4, %v2106_v10  ;;  %v2111_v46 = vmul.f32 %v4092_v48, %v4968_v60 }
 0x325   : > { %3901 = vmatmul.mubr.msk.f32.gmra.mxu1 %vm1902_vm4, %v2110_v31  ;;  %3921 = vmatpush3.msra.mxu0 %v4833_v21  ;;  %v2074_v29 = vpop.xlane.xlu1 %2073  ;;  %v2107_v38 = vmul.f32 %v4094_v33, %v4970_v2  ;;  %v2590_v33 = vld [vmem:[%s5283_s4 + $0x10] sm:$0xff] }
 0x326   : > { %3942 = vmatpush3.msra.mxu1 %v4843_v34  ;;  %3903 = vmatprep.mubr.msk.f32.mxu1 %vm4130_vm1, %v5288_v18  ;;  %4107 = vrcp.f32 %v2074_v29  ;;  %v2062_v50 = vpop.xlane.xlu0 %2061 }
 0x327   : > { %v4096_v57 = vpop.eup %4095  ;;  %3943 = vmatprep.subr.mxu1 %v5288_v18  ;;  %3881 = vmatprep.mubr.msk.f32.mxu0 %vm4130_vm1, %v5288_v18  ;;  %4109 = vrcp.f32 %v2062_v50 }
 0x328   : > { %v4098_v21 = vpop.eup %4097  ;;  %3944 = vmatpush3.msra.mxu1 %v4839_v30  ;;  %3882 = vmatmul.mubr.msk.f32.gmra.mxu0 %vm1902_vm4, %v2107_v38  ;;  %v2112_v2 = vmul.f32 %v4096_v57, %v4978_v45  ;;  %v2591_v57 = vld [vmem:[%s5283_s4 + $0x18] sm:$0xff] }
 0x329   : > { %3945 = vmatprep.subr.mxu1 %v5288_v18  ;;  %3904 = vmatmul.mubr.msk.f32.gmra.mxu1 %vm1902_vm4, %v2111_v46  ;;  %v2077_v34 = vpop.xlane.xlu1 %2076  ;;  %v2108_v60 = vmul.f32 %v4098_v21, %v4980_v6 }
 0x32a   : > { %3946 = vmatpush3.msra.mxu1 %v4835_v22  ;;  %3906 = vmatprep.mubr.msk.f32.mxu1 %vm4130_vm1, %v5288_v18  ;;  %4111 = vrcp.f32 %v2077_v34  ;;  %v2065_v25 = vpop.xlane.xlu0 %2064 }
 0x32b   : > { %v4100_v47 = vpop.eup %4099  ;;  %3884 = vmatprep.mubr.msk.f32.mxu0 %vm4130_vm1, %v5288_v18  ;;  %4113 = vrcp.f32 %v2065_v25  ;;  %3962 = vmatprep.subr.mxu0 %v5288_v18 }
 0x32c   : > { %v4102_v30 = vpop.eup %4101  ;;  %3885 = vmatmul.mubr.msk.f32.gmra.mxu0 %vm1902_vm4, %v2108_v60  ;;  %3979 = vmatprep.subr.mxu1 %v5288_v18  ;;  %v2113_v6 = vmul.f32 %v4100_v47, %v4988_v35 }
 0x32d   : > { %v2114_v45 = vmul.f32 %v4102_v30, %v4990_v53  ;;  %3907 = vmatmul.mubr.msk.f32.gmra.mxu1 %vm1902_vm4, %v2112_v2  ;;  %v2080_v22 = vpop.xlane.xlu1 %2079  ;;  %3922 = vmatprep.mubr.msk.f32.mxu0 %vm4130_vm1, %v5288_v18 }
 0x32e   : > { %3909 = vmatprep.mubr.msk.f32.mxu1 %vm4130_vm1, %v5288_v18  ;;  %4115 = vrcp.f32 %v2080_v22  ;;  %v2068_v1 = vpop.xlane.xlu0 %2067 }
 0x32f   : > { %v4104_v26 = vpop.eup %4103  ;;  %4117 = vrcp.f32 %v2068_v1 }
 0x330   : > { %v4106_v53 = vpop.eup %4105  ;;  %3923 = vmatmul.mubr.msk.f32.vlgmr.msra.gmra.mxu0 %vm1902_vm4, %v2114_v45  ;;  %v2119_v5 = vmul.f32 %v4104_v26, %v4997_v44 }
 0x331   : > { %3910 = vmatmul.mubr.msk.f32.gmra.mxu1 %vm1902_vm4, %v2113_v6  ;;  %v2083_v43 = vpop.xlane.xlu1 %2082  ;;  %3925 = vmatprep.mubr.msk.f32.mxu0 %vm4130_vm1, %v5288_v18  ;;  %v2115_v35 = vmul.f32 %v4106_v53, %v4999_v9 }
 0x332   : > { %3947 = vmatprep.mubr.msk.f32.mxu1 %vm4130_vm1, %v5288_v18  ;;  %4119 = vrcp.f32 %v2083_v43  ;;  %3963 = vmatpush3.msra.mxu0 %v2588_v39 }
 0x333   : > { %v4108_v40 = vpop.eup %4107  ;;  %3996 = vmatprep.subr.mxu0 %v5288_v18 }
 0x334   : > { %v4110_v44 = vpop.eup %4109  ;;  %3926 = vmatmul.mubr.msk.f32.gmra.mxu0 %vm1902_vm4, %v2115_v35  ;;  %v2120_v49 = vmul.f32 %v4108_v40, %v5005_v0 }
 0x335   : > { %3948 = vmatmul.mubr.msk.f32.vlgmr.msra.gmra.mxu1 %vm1902_vm4, %v2119_v5  ;;  %3928 = vmatprep.mubr.msk.f32.mxu0 %vm4130_vm1, %v5288_v18  ;;  %v2116_v9 = vmul.f32 %v4110_v44, %v5007_v56 }
 0x336   : > { %3950 = vmatprep.mubr.msk.f32.mxu1 %vm4130_vm1, %v5288_v18  ;;  %3980 = vmatpush3.msra.mxu1 %v2589_v36 }
 0x337   : > { %v4112_v61 = vpop.eup %4111  ;;  %4013 = vmatprep.subr.mxu1 %v5288_v18 }
 0x338   : > { %v4114_v41 = vpop.eup %4113  ;;  %3929 = vmatmul.mubr.msk.f32.gmra.mxu0 %vm1902_vm4, %v2116_v9  ;;  %v2121_v56 = vmul.f32 %v4112_v61, %v5013_v13 }
 0x339   : > { %3951 = vmatmul.mubr.msk.f32.gmra.mxu1 %vm1902_vm4, %v2120_v49  ;;  %3931 = vmatprep.mubr.msk.f32.mxu0 %vm4130_vm1, %v5288_v18  ;;  %v2117_v51 = vmul.f32 %v4114_v41, %v5015_v14 }
 0x33a   : > { %3953 = vmatprep.mubr.msk.f32.mxu1 %vm4130_vm1, %v5288_v18 }
 0x33b   : > { %v4116_v0 = vpop.eup %4115 }
 0x33c   : > { %v4118_v37 = vpop.eup %4117  ;;  %3932 = vmatmul.mubr.msk.f32.gmra.mxu0 %vm1902_vm4, %v2117_v51  ;;  %v2122_v31 = vmul.f32 %v4116_v0, %v5021_v17  ;;  %v2124_v17 = vlaneseq }
 0x33d   : > { %3954 = vmatmul.mubr.msk.f32.gmra.mxu1 %vm1902_vm4, %v2121_v56  ;;  %3934 = vmatprep.mubr.msk.f32.mxu0 %vm4130_vm1, %v5288_v18  ;;  %v2118_v10 = vmul.f32 %v4118_v37, %v5023_v32 }
 0x33e   : > { %3956 = vmatprep.mubr.msk.f32.mxu1 %vm4130_vm1, %v5288_v18  ;;  %v5143_v32 = vshrl.u32 %v2124_v17, 7 }
 0x33f   : > { %v4120_v13 = vpop.eup %4119 }
 0x340   : > { %3935 = vmatmul.mubr.msk.f32.gmra.mxu0 %vm1902_vm4, %v2118_v10  ;;  %v2123_v14 = vmul.f32 %v4120_v13, %v5029_v52  ;;  %vm2130_vm6 = vcmp.ge.s32.totalorder %v5143_v32, 1 }
 0x341   : > { %3957 = vmatmul.mubr.msk.f32.gmra.mxu1 %vm1902_vm4, %v2122_v31  ;;  %3964 = vmatprep.mubr.msk.f32.mxu0 %vm4130_vm1, %v5288_v18  ;;  %v2135_v52 = vsel %vm2130_vm6, %v4637_v54, 0.0  ;;  %v2140_v38 = vsel %vm2130_vm6, %v4639_v55, 0.0  ;;  %v2145_v43 = vsel %vm2130_vm6, %v4657_v11, 0.0  ;;  %v2150_v49 = vsel %vm2130_vm6, %v4659_v12, 0.0 }
 0x342   : > { %3959 = vmatprep.mubr.msk.f32.mxu1 %vm4130_vm1, %v5288_v18 }
 0x345   : > { %3960 = vmatmul.mubr.msk.f32.gmra.mxu1 %vm1902_vm4, %v2123_v14 }
 0x346   : > { %3981 = vmatprep.mubr.msk.f32.mxu1 %vm4130_vm1, %v5288_v18 }
 0x3da   : > { %v2240_v42 = vpop.f32.mrf.mxu0 }
 0x3db   : > { %v2241_v48 = vadd.f32 %v2240_v42, %v2135_v52 }
 0x3dc   : > { %v3874_v29 = vpop.f32.mrf.mxu0 }
 0x3dd   : > { %3965 = vmatmul.mubr.msk.f32.vlgmr.msra.gmra.mxu0 %vm1421_vm2, %v2241_v48 }
 0x3de   : > { %v2348_v46 = vpop.f32.mrf.mxu1  ;;  %3967 = vmatprep.mubr.msk.f32.mxu0 %vm4130_vm1, %v5288_v18  ;;  %3997 = vmatpush3.msra.mxu0 %v2590_v33 }
 0x3df   : > { %v2245_v50 = vpop.f32.mrf.mxu0  ;;  %v2349_v54 = vadd.f32 %v2348_v46, %v2140_v38 }
 0x3e0   : > { %v2246_v21 = vadd.f32 %v2245_v50, %v4641_v58  ;;  %v3899_v34 = vpop.f32.mrf.mxu1 }
 0x3e1   : > { %v3877_v60 = vpop.f32.mrf.mxu0  ;;  %3982 = vmatmul.mubr.msk.f32.vlgmr.msra.gmra.mxu1 %vm1421_vm2, %v2349_v54 }
 0x3e2   : > { %3968 = vmatmul.mubr.msk.f32.gmra.mxu0 %vm1421_vm2, %v2246_v21  ;;  %4014 = vmatpush3.msra.mxu1 %v2591_v57 }
 0x3e3   : > { %3970 = vmatprep.mubr.msk.f32.mxu0 %vm4130_vm1, %v5288_v18  ;;  %3984 = vmatprep.mubr.msk.f32.mxu1 %vm4130_vm1, %v5288_v18 }
 0x3e4   : > { %v2250_v55 = vpop.f32.mrf.mxu0 }
 0x3e5   : > { %v2251_v2 = vadd.f32 %v2250_v55, %v4645_v62  ;;  %v2353_v25 = vpop.f32.mrf.mxu1 }
 0x3e6   : > { %v2354_v47 = vadd.f32 %v2353_v25, %v4643_v59  ;;  %v3880_v58 = vpop.f32.mrf.mxu0 }
 0x3e7   : > { %v3902_v30 = vpop.f32.mrf.mxu1  ;;  %3971 = vmatmul.mubr.msk.f32.gmra.mxu0 %vm1421_vm2, %v2251_v2 }
 0x3e8   : > { %3985 = vmatmul.mubr.msk.f32.gmra.mxu1 %vm1421_vm2, %v2354_v47  ;;  %v2255_v45 = vpop.f32.mrf.mxu0  ;;  %3973 = vmatprep.mubr.msk.f32.mxu0 %vm4130_vm1, %v5288_v18 }
 0x3e9   : > { %v2256_v22 = vadd.f32 %v2255_v45, %v4649_v3  ;;  %v2358_v6 = vpop.f32.mrf.mxu1  ;;  %3987 = vmatprep.mubr.msk.f32.mxu1 %vm4130_vm1, %v5288_v18 }
 0x3ea   : > { %v2359_v62 = vadd.f32 %v2358_v6, %v4647_v63  ;;  %v3883_v1 = vpop.f32.mrf.mxu0 }
 0x3eb   : > { %v3905_v59 = vpop.f32.mrf.mxu1  ;;  %3974 = vmatmul.mubr.msk.f32.gmra.mxu0 %vm1421_vm2, %v2256_v22 }
 0x3ec   : > { %3988 = vmatmul.mubr.msk.f32.gmra.mxu1 %vm1421_vm2, %v2359_v62  ;;  %v2260_v26 = vpop.f32.mrf.mxu0  ;;  %3976 = vmatprep.mubr.msk.f32.mxu0 %vm4130_vm1, %v5288_v18 }
 0x3ed   : > { %v2261_v39 = vadd.f32 %v2260_v26, %v4653_v7  ;;  %v2363_v53 = vpop.f32.mrf.mxu1  ;;  %3990 = vmatprep.mubr.msk.f32.mxu1 %vm4130_vm1, %v5288_v18 }
 0x3ee   : > { %v2364_v3 = vadd.f32 %v2363_v53, %v4651_v4  ;;  %v3886_v5 = vpop.f32.mrf.mxu0 }
 0x3ef   : > { %v3908_v63 = vpop.f32.mrf.mxu1  ;;  %3977 = vmatmul.mubr.msk.f32.gmra.mxu0 %vm1421_vm2, %v2261_v39 }
 0x3f0   : > { %3991 = vmatmul.mubr.msk.f32.gmra.mxu1 %vm1421_vm2, %v2364_v3  ;;  %v2456_v35 = vpop.f32.mrf.mxu0  ;;  %3998 = vmatprep.mubr.msk.f32.mxu0 %vm4130_vm1, %v5288_v18 }
 0x3f1   : > { %v2368_v7 = vpop.f32.mrf.mxu1  ;;  %v2457_v40 = vadd.f32 %v2456_v35, %v2145_v43  ;;  %3993 = vmatprep.mubr.msk.f32.mxu1 %vm4130_vm1, %v5288_v18 }
 0x3f2   : > { %v2369_v4 = vadd.f32 %v2368_v7, %v4655_v8  ;;  %v3924_v36 = vpop.f32.mrf.mxu0 }
 0x3f3   : > { %v3911_v44 = vpop.f32.mrf.mxu1  ;;  %3999 = vmatmul.mubr.msk.f32.vlgmr.msra.gmra.mxu0 %vm1421_vm2, %v2457_v40 }
 0x3f4   : > { %3994 = vmatmul.mubr.msk.f32.gmra.mxu1 %vm1421_vm2, %v2369_v4  ;;  %v2461_v9 = vpop.f32.mrf.mxu0  ;;  %4001 = vmatprep.mubr.msk.f32.mxu0 %vm4130_vm1, %v5288_v18  ;;  %v3271_v4 = vld [vmem:[%s5284_s5] ss:$0 sm:$0xff] }
 0x3f5   : > { %v2462_v11 = vadd.f32 %v2461_v9, %v4661_v15  ;;  %v2564_v61 = vpop.f32.mrf.mxu1  ;;  %4015 = vmatprep.mubr.msk.f32.mxu1 %vm4130_vm1, %v5288_v18 }
 0x3f6   : > { %v2565_v8 = vadd.f32 %v2564_v61, %v2150_v49  ;;  %v3927_v41 = vpop.f32.mrf.mxu0 }
 0x3f7   : > { %v3949_v51 = vpop.f32.mrf.mxu1  ;;  %4002 = vmatmul.mubr.msk.f32.gmra.mxu0 %vm1421_vm2, %v2462_v11 }
 0x3f8   : > { %4016 = vmatmul.mubr.msk.f32.vlgmr.msra.gmra.mxu1 %vm1421_vm2, %v2565_v8  ;;  %v2466_v56 = vpop.f32.mrf.mxu0  ;;  %4004 = vmatprep.mubr.msk.f32.mxu0 %vm4130_vm1, %v5288_v18 }
 0x3f9   : > { %v2467_v15 = vadd.f32 %v2466_v56, %v4665_v19  ;;  %v2569_v0 = vpop.f32.mrf.mxu1  ;;  %4018 = vmatprep.mubr.msk.f32.mxu1 %vm4130_vm1, %v5288_v18 }
 0x3fa   : > { %v2570_v12 = vadd.f32 %v2569_v0, %v4663_v16  ;;  %v3930_v37 = vpop.f32.mrf.mxu0 }
 0x3fb   : > { %v3952_v10 = vpop.f32.mrf.mxu1  ;;  %4005 = vmatmul.mubr.msk.f32.gmra.mxu0 %vm1421_vm2, %v2467_v15 }
 0x3fc   : > { %4019 = vmatmul.mubr.msk.f32.gmra.mxu1 %vm1421_vm2, %v2570_v12  ;;  %v2471_v31 = vpop.f32.mrf.mxu0  ;;  %4007 = vmatprep.mubr.msk.f32.mxu0 %vm4130_vm1, %v5288_v18 }
 0x3fd   : > { %v2472_v13 = vadd.f32 %v2471_v31, %v4669_v23  ;;  %v2574_v14 = vpop.f32.mrf.mxu1  ;;  %4021 = vmatprep.mubr.msk.f32.mxu1 %vm4130_vm1, %v5288_v18 }
 0x3fe   : > { %v2575_v19 = vadd.f32 %v2574_v14, %v4667_v20  ;;  %v3933_v17 = vpop.f32.mrf.mxu0 }
 0x3ff   : > { %v3955_v16 = vpop.f32.mrf.mxu1  ;;  %4008 = vmatmul.mubr.msk.f32.gmra.mxu0 %vm1421_vm2, %v2472_v13 }
 0x400   : > { %4022 = vmatmul.mubr.msk.f32.gmra.mxu1 %vm1421_vm2, %v2575_v19  ;;  %v2476_v32 = vpop.f32.mrf.mxu0  ;;  %4010 = vmatprep.mubr.msk.f32.mxu0 %vm4130_vm1, %v5288_v18 }
 0x401   : > { %v2477_v52 = vadd.f32 %v2476_v32, %v4673_v27  ;;  %v2579_v42 = vpop.f32.mrf.mxu1  ;;  %4024 = vmatprep.mubr.msk.f32.mxu1 %vm4130_vm1, %v5288_v18 }
 0x402   : > { %v2580_v23 = vadd.f32 %v2579_v42, %v4671_v24  ;;  %v3936_v48 = vpop.f32.mrf.mxu0 }
 0x403   : > { %v3958_v20 = vpop.f32.mrf.mxu1  ;;  %4011 = vmatmul.mubr.msk.f32.gmra.mxu0 %vm1421_vm2, %v2477_v52 }
 0x404   : > { %4025 = vmatmul.mubr.msk.f32.gmra.mxu1 %vm1421_vm2, %v2580_v23 }
 0x405   : > { %v2584_v33 = vpop.f32.mrf.mxu1  ;;  %4027 = vmatprep.mubr.msk.f32.mxu1 %vm4130_vm1, %v5288_v18 }
 0x406   : > { %v2585_v29 = vadd.f32 %v2584_v33, %v4675_v28 }
 0x407   : > { %v3961_v38 = vpop.f32.mrf.mxu1 }
 0x408   : > { %4028 = vmatmul.mubr.msk.f32.gmra.mxu1 %vm1421_vm2, %v2585_v29 }
 0x49d   : > { %v2673_v27 = vpop.f32.mrf.mxu0 }
 0x49e   : > { %v3012_v1 = vsel %vm273_vm0, %v2673_v27, 0.0 }
 0x49f   : > { %v3966_v46 = vpop.f32.mrf.mxu0 }
 0x4a1   : > { %v2778_v50 = vpop.f32.mrf.mxu1 }
 0x4a2   : > { %v2678_v54 = vpop.f32.mrf.mxu0  ;;  %v3013_v22 = vsel %vm273_vm0, %v2778_v50, 0.0 }
 0x4a3   : > { %v3983_v24 = vpop.f32.mrf.mxu1  ;;  %v3014_v39 = vadd.f32 %v3013_v22, %v3012_v1  ;;  %v3019_v35 = vsel %vm273_vm0, %v2678_v54, 0.0 }
 0x4a4   : > { %v3969_v57 = vpop.f32.mrf.mxu0 }
 0x4a7   : > { %v2683_v21 = vpop.f32.mrf.mxu0 }
 0x4a8   : > { %v2783_v34 = vpop.f32.mrf.mxu1  ;;  %v3026_v56 = vsel %vm273_vm0, %v2683_v21, 0.0 }
 0x4a9   : > { %v3972_v60 = vpop.f32.mrf.mxu0  ;;  %v3020_v3 = vsel %vm273_vm0, %v2783_v34, 0.0 }
 0x4aa   : > { %v3986_v55 = vpop.f32.mrf.mxu1  ;;  %v3021_v44 = vadd.f32 %v3020_v3, %v3019_v35 }
 0x4ab   : > { %v2688_v2 = vpop.f32.mrf.mxu0 }
 0x4ac   : > { %v2788_v25 = vpop.f32.mrf.mxu1  ;;  %v3033_v32 = vsel %vm273_vm0, %v2688_v2, 0.0 }
 0x4ad   : > { %v3975_v47 = vpop.f32.mrf.mxu0  ;;  %v3027_v49 = vsel %vm273_vm0, %v2788_v25, 0.0 }
 0x4ae   : > { %v3989_v58 = vpop.f32.mrf.mxu1  ;;  %v3028_v37 = vadd.f32 %v3027_v49, %v3026_v56 }
 0x4af   : > { %v2693_v18 = vpop.f32.mrf.mxu0 }
 0x4b0   : > { %v2793_v30 = vpop.f32.mrf.mxu1  ;;  %v3041_v54 = vsel %vm3040_vm7, %v2693_v18, 0.0 }
 0x4b1   : > { %v3978_v28 = vpop.f32.mrf.mxu0  ;;  %v3034_v13 = vsel %vm273_vm0, %v2793_v30, 0.0 }
 0x4b2   : > { %v3992_v45 = vpop.f32.mrf.mxu1  ;;  %v3035_v48 = vadd.f32 %v3034_v13, %v3033_v32 }
 0x4b3   : > { %v2883_v6 = vpop.f32.mrf.mxu0 }
 0x4b4   : > { %v2798_v62 = vpop.f32.mrf.mxu1  ;;  %v3015_v59 = vsel %vm273_vm0, %v2883_v6, 0.0 }
 0x4b5   : > { %v4000_v26 = vpop.f32.mrf.mxu0  ;;  %v3016_v63 = vadd.f32 %v3015_v59, %v3014_v39  ;;  %v3042_v29 = vsel %vm3040_vm7, %v2798_v62, 0.0 }
 0x4b6   : > { %v3995_v53 = vpop.f32.mrf.mxu1  ;;  %v3043_v34 = vadd.f32 %v3042_v29, %v3041_v54 }
 0x4b7   : > { %v2888_v5 = vpop.f32.mrf.mxu0 }
 0x4b8   : > { %v2988_v43 = vpop.f32.mrf.mxu1  ;;  %v3022_v7 = vsel %vm273_vm0, %v2888_v5, 0.0 }
 0x4b9   : > { %v3017_v40 = vsel %vm273_vm0, %v2988_v43, 0.0  ;;  %v4003_v36 = vpop.f32.mrf.mxu0  ;;  %v3023_v8 = vadd.f32 %v3022_v7, %v3021_v44 }
 0x4ba   : > { %v3018_v9 = vadd.f32 %v3017_v40, %v3016_v63  ;;  %v4017_v11 = vpop.f32.mrf.mxu1 }
 0x4bb   : > { %v2893_v61 = vpop.f32.mrf.mxu0 }
 0x4bc   : > { %v3055_v41 = vadd.f32 %v3271_v4, %v3018_v9  ;;  %v2993_v51 = vpop.f32.mrf.mxu1  ;;  %v3029_v15 = vsel %vm273_vm0, %v2893_v61, 0.0 }
 0x4bd   : > { %v3024_v0 = vsel %vm273_vm0, %v2993_v51, 0.0  ;;  %v4006_v12 = vpop.f32.mrf.mxu0  ;;  %v3030_v19 = vadd.f32 %v3029_v15, %v3028_v37 }
 0x4be   : > { %3060 = vst.msk [vmem:[%s5252_s29] sm:$0xff] %vm273_vm0, %v3055_v41  ;;  %v3025_v10 = vadd.f32 %v3024_v0, %v3023_v8  ;;  %v4020_v31 = vpop.f32.mrf.mxu1 }
 0x4bf   : > { %v2898_v14 = vpop.f32.mrf.mxu0 }
 0x4c0   : > { %v3056_v17 = vadd.f32 %v3271_v4, %v3025_v10  ;;  %v2998_v16 = vpop.f32.mrf.mxu1  ;;  %v3036_v52 = vsel %vm273_vm0, %v2898_v14, 0.0 }
 0x4c1   : > { %v3031_v42 = vsel %vm273_vm0, %v2998_v16, 0.0  ;;  %v4009_v23 = vpop.f32.mrf.mxu0  ;;  %v3037_v27 = vadd.f32 %v3036_v52, %v3035_v48 }
 0x4c2   : > { %3061 = vst.msk [vmem:[%s5252_s29 + $0x8] sm:$0xff] %vm273_vm0, %v3056_v17  ;;  %v3032_v20 = vadd.f32 %v3031_v42, %v3030_v19  ;;  %v4023_v33 = vpop.f32.mrf.mxu1 }
 0x4c3   : > { %v2903_v38 = vpop.f32.mrf.mxu0 }
 0x4c4   : > { %v3057_v46 = vadd.f32 %v3271_v4, %v3032_v20  ;;  %v3003_v50 = vpop.f32.mrf.mxu1  ;;  %v3044_v24 = vsel %vm3040_vm7, %v2903_v38, 0.0 }
 0x4c5   : > { %v3038_v57 = vsel %vm273_vm0, %v3003_v50, 0.0  ;;  %v4012_v21 = vpop.f32.mrf.mxu0  ;;  %v3045_v2 = vadd.f32 %v3044_v24, %v3043_v34 }
 0x4c6   : > { %3062 = vst.msk [vmem:[%s5252_s29 + $0x10] sm:$0xff] %vm273_vm0, %v3057_v46  ;;  %v3039_v60 = vadd.f32 %v3038_v57, %v3037_v27  ;;  %v4026_v55 = vpop.f32.mrf.mxu1 }
 0x4c8   : > { %v3058_v25 = vadd.f32 %v3271_v4, %v3039_v60  ;;  %v3008_v47 = vpop.f32.mrf.mxu1 }
 0x4c9   : > { %v3046_v58 = vsel %vm3040_vm7, %v3008_v47, 0.0 }
 0x4ca   : > { %3063 = vst.msk [vmem:[%s5252_s29 + $0x18] sm:$0xff] %vm273_vm0, %v3058_v25  ;;  %v3047_v30 = vadd.f32 %v3046_v58, %v3045_v2  ;;  %v4029_v18 = vpop.f32.mrf.mxu1 }
 0x4cc   : > { %v3059_v28 = vadd.f32 %v3271_v4, %v3047_v30 }
 0x4ce   : > { %3064 = vst.msk [vmem:[%s5252_s29 + $0x20] sm:$0x1] %vm3040_vm7, %v3059_v28 }
 0x4cf PF: > { %s16_s21 = sadd.s32 1, %s4127_s21  }
 0x4d0   : > { %p13_p4 = scmp.ge.s32.totalorder %s16_s21, 4  }
 0x4d2   :  { %15 = sbr.rel (!%p13_p4) target bundleno = 1 (0x1), region = 74 }

</bundles_post_ra>
